<compile_context>
chip_gen: v7x
topology: tpu7x:2x2x1
jax: 0.10.0
libtpu: 0.0.40
codegen_flags: <defaults>
</compile_context>

<pallas_src>
import functools

import jax
import jax.numpy as jnp
from jax import lax
from jax.experimental import pallas as pl
from jax.experimental.pallas import tpu as pltpu

NEG_INF = -100000000.0  # matches masked_fill value in the PyTorch module


# ----------------------------------------------------------------------------
# Kernel bodies
# ----------------------------------------------------------------------------
def _swish(v):
    return v * jax.nn.sigmoid(v)


def _linear(x, w_ref, b_ref):
    # MXU matmul with bf16 operands, f32 accumulation; bias add in f32.
    return (
        jnp.dot(x.astype(jnp.bfloat16), w_ref[...],
                preferred_element_type=jnp.float32)
        + b_ref[...]
    )


def _mlp_logits(state_ref, w_refs, b_refs, gamma_ref, beta_ref, act_dtype):
    x = state_ref[...]  # bf16 tile straight from the DMA
    # fc1..fc4 + swish (elementwise in act_dtype: bf16 on v6e/v7x, f32 on v5e)
    for i in range(4):
        x = _swish(_linear(x, w_refs[i], b_refs[i]).astype(act_dtype))
    # fc5 (no activation), LayerNorm (torch defaults: eps=1e-5, biased var), f32
    h = _linear(x, w_refs[4], b_refs[4])
    mu = jnp.mean(h, axis=-1, keepdims=True)
    var = jnp.mean(jnp.square(h - mu), axis=-1, keepdims=True)
    h = (h - mu) * lax.rsqrt(var + 1e-5)
    h = h * gamma_ref[...] + beta_ref[...]
    h = _swish(h.astype(act_dtype))
    # fc6 -> logits (lane-dense padded width), f32
    return _linear(h, w_refs[5], b_refs[5])


def _mask_padding(logits, action_size, fill):
    # Mask the lane-padding columns (>= action_size) with `fill`.
    if logits.shape[-1] != action_size:
        col = lax.broadcasted_iota(jnp.int32, logits.shape, 1)
        logits = jnp.where(col < action_size, logits, fill)
    return logits


def _softmax_store(logits, out_ref):
    m = jnp.max(logits, axis=-1, keepdims=True)
    e = jnp.exp(logits - m)
    # Exact divide (approx reciprocal previously broke the sum-to-1 check).
    out_ref[...] = e / jnp.sum(e, axis=-1, keepdims=True)


def _actor_kernel_masked(state_ref, mask_ref,
                         w1, b1, w2, b2, w3, b3, w4, b4, w5, b5, w6, b6,
                         gamma_ref, beta_ref, out_ref, *,
                         act_dtype, action_size):
    logits = _mlp_logits(state_ref, (w1, w2, w3, w4, w5, w6),
                         (b1, b2, b3, b4, b5, b6), gamma_ref, beta_ref,
                         act_dtype)
    # mask is int8 (1 = valid); padded action columns carry 0.
    valid = mask_ref[...].astype(jnp.int32) != 0
    logits = jnp.where(valid, logits, NEG_INF)
    # Push the lane-padding columns strictly below the masked_fill value so a
    # fully-masked row still softmaxes over the real action columns only.
    logits = _mask_padding(logits, action_size, 2.0 * NEG_INF)
    _softmax_store(logits, out_ref)


def _actor_kernel_nomask(state_ref,
                         w1, b1, w2, b2, w3, b3, w4, b4, w5, b5, w6, b6,
                         gamma_ref, beta_ref, out_ref, *,
                         act_dtype, action_size):
    logits = _mlp_logits(state_ref, (w1, w2, w3, w4, w5, w6),
                         (b1, b2, b3, b4, b5, b6), gamma_ref, beta_ref,
                         act_dtype)
    logits = _mask_padding(logits, action_size, NEG_INF)
    _softmax_store(logits, out_ref)


# ----------------------------------------------------------------------------
# Wrapper
# ----------------------------------------------------------------------------
def _round_up(x, m):
    return (x + m - 1) // m * m


def _prefers_bf16_elementwise():
    # v6e / v7x have bf16 VPU & EUP; keep f32 elementwise everywhere else
    # (v5e has neither; unknown backends default to the safe f32 choice).
    try:
        kind = jax.devices()[0].device_kind.lower()
    except Exception:
        return False
    return ("v6" in kind) or ("v7" in kind)


def _vmem_limit_bytes(tb, s, h, a_pad, masked):
    f32, bf16, i8 = 4, 2, 1
    per_step = tb * s * bf16 + tb * a_pad * f32 + (tb * a_pad * i8 if masked else 0)
    streamed = 2 * per_step                                    # double-buffered tiles
    resident = 2 * ((s * h + 4 * h * h + h * a_pad) * bf16     # weights (2 buffers)
                    + (7 * h + a_pad) * f32)                   # biases + gamma/beta
    live = 6 * tb * h * f32 + 2 * tb * a_pad * f32             # in-flight activations
    est = streamed + resident + live
    return int(min(64 * 1024 * 1024, max(16 * 1024 * 1024, 8 * est)))


def actor_forward(state, params, action_mask=None, *, block_b=512,
                  bf16_activations=None):
    """state: (B, state_size); action_mask: optional (B, action_size) bool."""
    state = jnp.asarray(state)
    B, S = state.shape
    A = params["w6"].shape[1]
    H = params["w1"].shape[1]

    if bf16_activations is None:
        bf16_activations = _prefers_bf16_elementwise()
    act_dtype = jnp.bfloat16 if bf16_activations else jnp.float32

    # Batch tiling: big tiles (per-step overhead dominates at these sizes),
    # rounded to a multiple of 128; keep >=2 steps for large batches so the
    # "parallel" batch axis can shard across v7x's two TensorCores.
    block_b = _round_up(block_b, 128)
    TB = min(block_b, _round_up(B, 128))
    if TB >= 256 and _round_up(B, TB) // TB == 1:
        TB //= 2
    B_pad = _round_up(B, TB)

    # Lane-dense output width (multiple of 128); fc6 weight/bias zero-padded.
    A_pad = _round_up(max(A, 128), 128)

    # Streamed state: bf16 (it feeds a bf16 MXU dot anyway -> half the DMA).
    state = state.astype(jnp.bfloat16)
    if B_pad != B:
        state = jnp.pad(state, ((0, B_pad - B), (0, 0)))

    w = [params[f"w{i}"] for i in range(1, 7)]
    b = [params[f"b{i}"] for i in range(1, 7)]
    w6 = jnp.pad(w[5], ((0, 0), (0, A_pad - A)))
    b6 = jnp.pad(b[5], ((0, 0), (0, A_pad - A)))
    # bf16 weights for the MXU (f32 accumulate in-kernel); biases stay f32.
    w_args = [wi.astype(jnp.bfloat16) for wi in w[:5]] + [w6.astype(jnp.bfloat16)]
    b_args = [bi.astype(jnp.float32) for bi in b[:5]] + [b6.astype(jnp.float32)]
    gamma = params["gamma"].astype(jnp.float32)
    beta = params["beta"].astype(jnp.float32)

    def row_spec(width):
        return pl.BlockSpec((TB, width), lambda i: (i, 0))

    def resident_spec(arr):
        # Constant index_map -> fetched once, VMEM-resident across grid steps.
        return pl.BlockSpec(arr.shape, lambda i: (0, 0))

    weight_args, weight_specs = [], []
    for wi, bi in zip(w_args, b_args):
        weight_args += [wi, bi]
        weight_specs += [resident_spec(wi), resident_spec(bi)]
    weight_args += [gamma, beta]
    weight_specs += [resident_spec(gamma), resident_spec(beta)]

    grid = (B_pad // TB,)
    compiler_params = pltpu.CompilerParams(
        dimension_semantics=("parallel",),
        vmem_limit_bytes=_vmem_limit_bytes(TB, S, H, A_pad,
                                           masked=action_mask is not None),
    )
    out_shape = jax.ShapeDtypeStruct((B_pad, A_pad), jnp.float32)
    out_spec = row_spec(A_pad)

    if action_mask is None:
        # Specialized kernel: no mask array is materialized or DMA'd.
        kernel = functools.partial(_actor_kernel_nomask,
                                   act_dtype=act_dtype, action_size=A)
        out = pl.pallas_call(
            kernel,
            grid=grid,
            in_specs=[row_spec(S)] + weight_specs,
            out_specs=out_spec,
            out_shape=out_shape,
            compiler_params=compiler_params,
        )(state, *weight_args)
    else:
        mask = jnp.asarray(action_mask).astype(jnp.int8)  # 4x cheaper than f32
        mask = jnp.pad(mask, ((0, B_pad - B), (0, A_pad - A)))  # pads invalid
        kernel = functools.partial(_actor_kernel_masked,
                                   act_dtype=act_dtype, action_size=A)
        out = pl.pallas_call(
            kernel,
            grid=grid,
            in_specs=[row_spec(S), row_spec(A_pad)] + weight_specs,
            out_specs=out_spec,
            out_shape=out_shape,
            compiler_params=compiler_params,
        )(state, mask, *weight_args)

    return out[:B, :A]


# ----------------------------------------------------------------------------
# Deterministic parameter init (orthogonal weights, zero bias, LN gamma=1 beta=0)
# ----------------------------------------------------------------------------
def _orthogonal(key, in_dim, out_dim):
    a = jax.random.normal(key, (max(in_dim, out_dim), min(in_dim, out_dim)),
                          jnp.float32)
    q, r = jnp.linalg.qr(a)
    d = jnp.sign(jnp.diagonal(r))
    q = q * d[None, :]
    if in_dim < out_dim:
        q = q.T
    return q[:in_dim, :out_dim].astype(jnp.float32)


def init_params(key, state_size, action_size, hidden_size):
    ks = jax.random.split(key, 6)
    dims = [(state_size, hidden_size)] + [(hidden_size, hidden_size)] * 4 + \
           [(hidden_size, action_size)]
    params = {}
    for i, (k, (din, dout)) in enumerate(zip(ks, dims), start=1):
        params[f"w{i}"] = _orthogonal(k, din, dout)
        params[f"b{i}"] = jnp.zeros((1, dout), jnp.float32)
    params["gamma"] = jnp.ones((1, hidden_size), jnp.float32)
    params["beta"] = jnp.zeros((1, hidden_size), jnp.float32)
    return params


# ----------------------------------------------------------------------------
# Pure-JAX f32 reference (mirrors the PyTorch module exactly)
# ----------------------------------------------------------------------------
def reference_forward(state, params, action_mask=None):
    def swish(v):
        return v * jax.nn.sigmoid(v)
    x = swish(state @ params["w1"] + params["b1"])
    x = swish(x @ params["w2"] + params["b2"])
    x = swish(x @ params["w3"] + params["b3"])
    x = swish(x @ params["w4"] + params["b4"])
    h = x @ params["w5"] + params["b5"]
    mu = jnp.mean(h, axis=-1, keepdims=True)
    var = jnp.mean((h - mu) ** 2, axis=-1, keepdims=True)
    h = (h - mu) * jax.lax.rsqrt(var + 1e-5) * params["gamma"] + params["beta"]
    h = swish(h)
    logits = h @ params["w6"] + params["b6"]
    if action_mask is not None:
        logits = jnp.where(action_mask, logits, NEG_INF)
    return jax.nn.softmax(logits, axis=-1)


if __name__ == "__main__":
    state_size, action_size, hidden_size = 16, 8, 32
    batch = 8  # small demo batch (padded to a single 128-row tile internally)

    key = jax.random.PRNGKey(0)
    k_param, k_state, k_mask = jax.random.split(key, 3)

    params = init_params(k_param, state_size, action_size, hidden_size)
    state = jax.random.normal(k_state, (batch, state_size), jnp.float32)
    action_mask = jax.random.uniform(k_mask, (batch, action_size)) > 0.3
    action_mask = action_mask.at[:, 0].set(True)  # >=1 valid action per row

    # Masked path.
    probs = jax.block_until_ready(actor_forward(state, params, action_mask))
    ref = reference_forward(state, params, action_mask)
    assert probs.shape == (batch, action_size)
    # Exact softmax divide -> rows sum to 1 up to f32 rounding.
    assert bool(jnp.all(jnp.abs(jnp.sum(probs, axis=-1) - 1.0) < 1e-3))
    # bf16 MXU operands => slightly looser tolerance vs. the f32 reference.
    assert bool(jnp.allclose(probs, ref, atol=5e-2, rtol=5e-2))
    # No probability mass on masked-out actions.
    assert bool(jnp.all(jnp.where(action_mask, 0.0, probs) < 1e-6))

    # No-mask path (specialized kernel, no mask DMA).
    probs_nm = jax.block_until_ready(actor_forward(state, params, None))
    ref_nm = reference_forward(state, params, None)
    assert probs_nm.shape == (batch, action_size)
    assert bool(jnp.all(jnp.abs(jnp.sum(probs_nm, axis=-1) - 1.0) < 1e-3))
    assert bool(jnp.allclose(probs_nm, ref_nm, atol=5e-2, rtol=5e-2))

    print("KERNEL_OK")
</pallas_src>

<mosaic_0001>
module attributes {stable_mosaic.version = 11 : i64} {
  func.func @_actor_kernel_masked(%arg0: i32, %arg1: memref<128x16xbf16, #tpu.memory_space<vmem>>, %arg2: memref<128x128xi8, #tpu.memory_space<vmem>>, %arg3: memref<16x32xbf16, #tpu.memory_space<vmem>>, %arg4: memref<1x32xf32, #tpu.memory_space<vmem>>, %arg5: memref<32x32xbf16, #tpu.memory_space<vmem>>, %arg6: memref<1x32xf32, #tpu.memory_space<vmem>>, %arg7: memref<32x32xbf16, #tpu.memory_space<vmem>>, %arg8: memref<1x32xf32, #tpu.memory_space<vmem>>, %arg9: memref<32x32xbf16, #tpu.memory_space<vmem>>, %arg10: memref<1x32xf32, #tpu.memory_space<vmem>>, %arg11: memref<32x32xbf16, #tpu.memory_space<vmem>>, %arg12: memref<1x32xf32, #tpu.memory_space<vmem>>, %arg13: memref<32x128xbf16, #tpu.memory_space<vmem>>, %arg14: memref<1x128xf32, #tpu.memory_space<vmem>>, %arg15: memref<1x32xf32, #tpu.memory_space<vmem>>, %arg16: memref<1x32xf32, #tpu.memory_space<vmem>>, %arg17: memref<128x128xf32, #tpu.memory_space<vmem>>) attributes {dimension_semantics = [#tpu.dimension_semantics<parallel>], iteration_bounds = array<i64: 1>, scalar_prefetch = 0 : i64, scratch_operands = 0 : i64, tpu.core_type = #tpu.core_type<tc>, window_params = [{transform_indices = @transform_0, window_bounds = array<i64: 128, 16>}, {transform_indices = @transform_1, window_bounds = array<i64: 128, 128>}, {pipeline_mode = #tpu.pipeline_mode<synchronous>, transform_indices = @transform_2, window_bounds = array<i64: 16, 32>}, {pipeline_mode = #tpu.pipeline_mode<synchronous>, transform_indices = @transform_3, window_bounds = array<i64: 1, 32>}, {pipeline_mode = #tpu.pipeline_mode<synchronous>, transform_indices = @transform_4, window_bounds = array<i64: 32, 32>}, {pipeline_mode = #tpu.pipeline_mode<synchronous>, transform_indices = @transform_5, window_bounds = array<i64: 1, 32>}, {pipeline_mode = #tpu.pipeline_mode<synchronous>, transform_indices = @transform_6, window_bounds = array<i64: 32, 32>}, {pipeline_mode = #tpu.pipeline_mode<synchronous>, transform_indices = @transform_7, window_bounds = array<i64: 1, 32>}, {pipeline_mode = #tpu.pipeline_mode<synchronous>, transform_indices = @transform_8, window_bounds = array<i64: 32, 32>}, {pipeline_mode = #tpu.pipeline_mode<synchronous>, transform_indices = @transform_9, window_bounds = array<i64: 1, 32>}, {pipeline_mode = #tpu.pipeline_mode<synchronous>, transform_indices = @transform_10, window_bounds = array<i64: 32, 32>}, {pipeline_mode = #tpu.pipeline_mode<synchronous>, transform_indices = @transform_11, window_bounds = array<i64: 1, 32>}, {pipeline_mode = #tpu.pipeline_mode<synchronous>, transform_indices = @transform_12, window_bounds = array<i64: 32, 128>}, {pipeline_mode = #tpu.pipeline_mode<synchronous>, transform_indices = @transform_13, window_bounds = array<i64: 1, 128>}, {pipeline_mode = #tpu.pipeline_mode<synchronous>, transform_indices = @transform_14, window_bounds = array<i64: 1, 32>}, {pipeline_mode = #tpu.pipeline_mode<synchronous>, transform_indices = @transform_15, window_bounds = array<i64: 1, 32>}, {transform_indices = @transform_16, window_bounds = array<i64: 128, 128>}]} {
    %c0 = arith.constant 0 : index
    %c0_0 = arith.constant 0 : index
    %0 = vector.load %arg1[%c0, %c0_0] : memref<128x16xbf16, #tpu.memory_space<vmem>>, vector<128x16xbf16>
    %c0_1 = arith.constant 0 : index
    %c0_2 = arith.constant 0 : index
    %1 = vector.load %arg3[%c0_1, %c0_2] : memref<16x32xbf16, #tpu.memory_space<vmem>>, vector<16x32xbf16>
    %cst = arith.constant dense<0.000000e+00> : vector<128x32xf32>
    %2 = tpu.matmul %0, %1, %cst {dimension_numbers = #tpu.dot_dimension_numbers<[1], [0], [0], [1], [0, 0, 1, 1], [], []>} : vector<128x16xbf16>, vector<16x32xbf16>, vector<128x32xf32> -> vector<128x32xf32>
    %c0_3 = arith.constant 0 : index
    %c0_4 = arith.constant 0 : index
    %3 = vector.load %arg4[%c0_3, %c0_4] : memref<1x32xf32, #tpu.memory_space<vmem>>, vector<1x32xf32>
    %4 = vector.broadcast %3 : vector<1x32xf32> to vector<128x32xf32>
    %5 = arith.addf %2, %4 : vector<128x32xf32>
    %6 = arith.negf %5 : vector<128x32xf32>
    %7 = math.exp %6 : vector<128x32xf32>
    %cst_5 = arith.constant 1.000000e+00 : f32
    %8 = vector.broadcast %cst_5 : f32 to vector<128x32xf32>
    %9 = arith.addf %8, %7 : vector<128x32xf32>
    %10 = arith.divf %8, %9 : vector<128x32xf32>
    %11 = arith.mulf %5, %10 : vector<128x32xf32>
    %12 = arith.truncf %11 : vector<128x32xf32> to vector<128x32xbf16>
    %c0_6 = arith.constant 0 : index
    %c0_7 = arith.constant 0 : index
    %13 = vector.load %arg5[%c0_6, %c0_7] : memref<32x32xbf16, #tpu.memory_space<vmem>>, vector<32x32xbf16>
    %cst_8 = arith.constant dense<0.000000e+00> : vector<128x32xf32>
    %14 = tpu.matmul %12, %13, %cst_8 {dimension_numbers = #tpu.dot_dimension_numbers<[1], [0], [0], [1], [0, 0, 1, 1], [], []>} : vector<128x32xbf16>, vector<32x32xbf16>, vector<128x32xf32> -> vector<128x32xf32>
    %c0_9 = arith.constant 0 : index
    %c0_10 = arith.constant 0 : index
    %15 = vector.load %arg6[%c0_9, %c0_10] : memref<1x32xf32, #tpu.memory_space<vmem>>, vector<1x32xf32>
    %16 = vector.broadcast %15 : vector<1x32xf32> to vector<128x32xf32>
    %17 = arith.addf %14, %16 : vector<128x32xf32>
    %18 = arith.negf %17 : vector<128x32xf32>
    %19 = math.exp %18 : vector<128x32xf32>
    %cst_11 = arith.constant 1.000000e+00 : f32
    %20 = vector.broadcast %cst_11 : f32 to vector<128x32xf32>
    %21 = arith.addf %20, %19 : vector<128x32xf32>
    %22 = arith.divf %20, %21 : vector<128x32xf32>
    %23 = arith.mulf %17, %22 : vector<128x32xf32>
    %24 = arith.truncf %23 : vector<128x32xf32> to vector<128x32xbf16>
    %c0_12 = arith.constant 0 : index
    %c0_13 = arith.constant 0 : index
    %25 = vector.load %arg7[%c0_12, %c0_13] : memref<32x32xbf16, #tpu.memory_space<vmem>>, vector<32x32xbf16>
    %cst_14 = arith.constant dense<0.000000e+00> : vector<128x32xf32>
    %26 = tpu.matmul %24, %25, %cst_14 {dimension_numbers = #tpu.dot_dimension_numbers<[1], [0], [0], [1], [0, 0, 1, 1], [], []>} : vector<128x32xbf16>, vector<32x32xbf16>, vector<128x32xf32> -> vector<128x32xf32>
    %c0_15 = arith.constant 0 : index
    %c0_16 = arith.constant 0 : index
    %27 = vector.load %arg8[%c0_15, %c0_16] : memref<1x32xf32, #tpu.memory_space<vmem>>, vector<1x32xf32>
    %28 = vector.broadcast %27 : vector<1x32xf32> to vector<128x32xf32>
    %29 = arith.addf %26, %28 : vector<128x32xf32>
    %30 = arith.negf %29 : vector<128x32xf32>
    %31 = math.exp %30 : vector<128x32xf32>
    %cst_17 = arith.constant 1.000000e+00 : f32
    %32 = vector.broadcast %cst_17 : f32 to vector<128x32xf32>
    %33 = arith.addf %32, %31 : vector<128x32xf32>
    %34 = arith.divf %32, %33 : vector<128x32xf32>
    %35 = arith.mulf %29, %34 : vector<128x32xf32>
    %36 = arith.truncf %35 : vector<128x32xf32> to vector<128x32xbf16>
    %c0_18 = arith.constant 0 : index
    %c0_19 = arith.constant 0 : index
    %37 = vector.load %arg9[%c0_18, %c0_19] : memref<32x32xbf16, #tpu.memory_space<vmem>>, vector<32x32xbf16>
    %cst_20 = arith.constant dense<0.000000e+00> : vector<128x32xf32>
    %38 = tpu.matmul %36, %37, %cst_20 {dimension_numbers = #tpu.dot_dimension_numbers<[1], [0], [0], [1], [0, 0, 1, 1], [], []>} : vector<128x32xbf16>, vector<32x32xbf16>, vector<128x32xf32> -> vector<128x32xf32>
    %c0_21 = arith.constant 0 : index
    %c0_22 = arith.constant 0 : index
    %39 = vector.load %arg10[%c0_21, %c0_22] : memref<1x32xf32, #tpu.memory_space<vmem>>, vector<1x32xf32>
    %40 = vector.broadcast %39 : vector<1x32xf32> to vector<128x32xf32>
    %41 = arith.addf %38, %40 : vector<128x32xf32>
    %42 = arith.negf %41 : vector<128x32xf32>
    %43 = math.exp %42 : vector<128x32xf32>
    %cst_23 = arith.constant 1.000000e+00 : f32
    %44 = vector.broadcast %cst_23 : f32 to vector<128x32xf32>
    %45 = arith.addf %44, %43 : vector<128x32xf32>
    %46 = arith.divf %44, %45 : vector<128x32xf32>
    %47 = arith.mulf %41, %46 : vector<128x32xf32>
    %48 = arith.truncf %47 : vector<128x32xf32> to vector<128x32xbf16>
    %c0_24 = arith.constant 0 : index
    %c0_25 = arith.constant 0 : index
    %49 = vector.load %arg11[%c0_24, %c0_25] : memref<32x32xbf16, #tpu.memory_space<vmem>>, vector<32x32xbf16>
    %cst_26 = arith.constant dense<0.000000e+00> : vector<128x32xf32>
    %50 = tpu.matmul %48, %49, %cst_26 {dimension_numbers = #tpu.dot_dimension_numbers<[1], [0], [0], [1], [0, 0, 1, 1], [], []>} : vector<128x32xbf16>, vector<32x32xbf16>, vector<128x32xf32> -> vector<128x32xf32>
    %c0_27 = arith.constant 0 : index
    %c0_28 = arith.constant 0 : index
    %51 = vector.load %arg12[%c0_27, %c0_28] : memref<1x32xf32, #tpu.memory_space<vmem>>, vector<1x32xf32>
    %52 = vector.broadcast %51 : vector<1x32xf32> to vector<128x32xf32>
    %53 = arith.addf %50, %52 : vector<128x32xf32>
    %cst_29 = arith.constant dense<0.000000e+00> : vector<128xf32>
    %54 = vector.multi_reduction <add>, %53, %cst_29 [1] : vector<128x32xf32> to vector<128xf32>
    %55 = vector.shape_cast %54 : vector<128xf32> to vector<128x1xf32>
    %cst_30 = arith.constant 3.200000e+01 : f32
    %56 = vector.broadcast %cst_30 : f32 to vector<128x1xf32>
    %57 = arith.divf %55, %56 : vector<128x1xf32>
    %58 = vector.broadcast %57 : vector<128x1xf32> to vector<128x32xf32>
    %59 = arith.subf %53, %58 : vector<128x32xf32>
    %60 = arith.mulf %59, %59 : vector<128x32xf32>
    %cst_31 = arith.constant dense<0.000000e+00> : vector<128xf32>
    %61 = vector.multi_reduction <add>, %60, %cst_31 [1] : vector<128x32xf32> to vector<128xf32>
    %62 = vector.shape_cast %61 : vector<128xf32> to vector<128x1xf32>
    %cst_32 = arith.constant 3.200000e+01 : f32
    %63 = vector.broadcast %cst_32 : f32 to vector<128x1xf32>
    %64 = arith.divf %62, %63 : vector<128x1xf32>
    %65 = vector.broadcast %57 : vector<128x1xf32> to vector<128x32xf32>
    %66 = arith.subf %53, %65 : vector<128x32xf32>
    %cst_33 = arith.constant 9.99999974E-6 : f32
    %67 = vector.broadcast %cst_33 : f32 to vector<128x1xf32>
    %68 = arith.addf %64, %67 : vector<128x1xf32>
    %69 = math.rsqrt %68 : vector<128x1xf32>
    %70 = vector.broadcast %69 : vector<128x1xf32> to vector<128x32xf32>
    %71 = arith.mulf %66, %70 : vector<128x32xf32>
    %c0_34 = arith.constant 0 : index
    %c0_35 = arith.constant 0 : index
    %72 = vector.load %arg15[%c0_34, %c0_35] : memref<1x32xf32, #tpu.memory_space<vmem>>, vector<1x32xf32>
    %73 = vector.broadcast %72 : vector<1x32xf32> to vector<128x32xf32>
    %74 = arith.mulf %71, %73 : vector<128x32xf32>
    %c0_36 = arith.constant 0 : index
    %c0_37 = arith.constant 0 : index
    %75 = vector.load %arg16[%c0_36, %c0_37] : memref<1x32xf32, #tpu.memory_space<vmem>>, vector<1x32xf32>
    %76 = vector.broadcast %75 : vector<1x32xf32> to vector<128x32xf32>
    %77 = arith.addf %74, %76 : vector<128x32xf32>
    %78 = arith.negf %77 : vector<128x32xf32>
    %79 = math.exp %78 : vector<128x32xf32>
    %cst_38 = arith.constant 1.000000e+00 : f32
    %80 = vector.broadcast %cst_38 : f32 to vector<128x32xf32>
    %81 = arith.addf %80, %79 : vector<128x32xf32>
    %82 = arith.divf %80, %81 : vector<128x32xf32>
    %83 = arith.mulf %77, %82 : vector<128x32xf32>
    %84 = arith.truncf %83 : vector<128x32xf32> to vector<128x32xbf16>
    %c0_39 = arith.constant 0 : index
    %c0_40 = arith.constant 0 : index
    %85 = vector.load %arg13[%c0_39, %c0_40] : memref<32x128xbf16, #tpu.memory_space<vmem>>, vector<32x128xbf16>
    %cst_41 = arith.constant dense<0.000000e+00> : vector<128x128xf32>
    %86 = tpu.matmul %84, %85, %cst_41 {dimension_numbers = #tpu.dot_dimension_numbers<[1], [0], [0], [1], [0, 0, 1, 1], [], []>} : vector<128x32xbf16>, vector<32x128xbf16>, vector<128x128xf32> -> vector<128x128xf32>
    %c0_42 = arith.constant 0 : index
    %c0_43 = arith.constant 0 : index
    %87 = vector.load %arg14[%c0_42, %c0_43] : memref<1x128xf32, #tpu.memory_space<vmem>>, vector<1x128xf32>
    %88 = vector.broadcast %87 : vector<1x128xf32> to vector<128x128xf32>
    %89 = arith.addf %86, %88 : vector<128x128xf32>
    %c0_44 = arith.constant 0 : index
    %c0_45 = arith.constant 0 : index
    %90 = vector.load %arg2[%c0_44, %c0_45] : memref<128x128xi8, #tpu.memory_space<vmem>>, vector<128x128xi8>
    %91 = arith.extsi %90 : vector<128x128xi8> to vector<128x128xi32>
    %c0_i32 = arith.constant 0 : i32
    %92 = vector.broadcast %c0_i32 : i32 to vector<128x128xi32>
    %93 = arith.cmpi ne, %91, %92 : vector<128x128xi32>
    %cst_46 = arith.constant -1.000000e+08 : f32
    %94 = vector.broadcast %cst_46 : f32 to vector<128x128xf32>
    %95 = arith.select %93, %89, %94 : vector<128x128xi1>, vector<128x128xf32>
    %96 = tpu.iota {dimensions = array<i32: 1>} : vector<128x128xi32>
    %c8_i32 = arith.constant 8 : i32
    %97 = vector.broadcast %c8_i32 : i32 to vector<128x128xi32>
    %98 = arith.cmpi slt, %96, %97 : vector<128x128xi32>
    %cst_47 = arith.constant -2.000000e+08 : f32
    %99 = vector.broadcast %cst_47 : f32 to vector<128x128xf32>
    %100 = arith.select %98, %95, %99 : vector<128x128xi1>, vector<128x128xf32>
    %cst_48 = arith.constant dense<0xFF800000> : vector<128xf32>
    %101 = vector.multi_reduction <maximumf>, %100, %cst_48 [1] : vector<128x128xf32> to vector<128xf32>
    %102 = vector.shape_cast %101 : vector<128xf32> to vector<128x1xf32>
    %103 = vector.broadcast %102 : vector<128x1xf32> to vector<128x128xf32>
    %104 = arith.subf %100, %103 : vector<128x128xf32>
    %105 = math.exp %104 : vector<128x128xf32>
    %cst_49 = arith.constant dense<0.000000e+00> : vector<128xf32>
    %106 = vector.multi_reduction <add>, %105, %cst_49 [1] : vector<128x128xf32> to vector<128xf32>
    %107 = vector.shape_cast %106 : vector<128xf32> to vector<128x1xf32>
    %108 = vector.broadcast %107 : vector<128x1xf32> to vector<128x128xf32>
    %109 = arith.divf %105, %108 : vector<128x128xf32>
    %c0_50 = arith.constant 0 : index
    %c0_51 = arith.constant 0 : index
    %110 = vector.load %arg17[%c0_50, %c0_51] : memref<128x128xf32, #tpu.memory_space<vmem>>, vector<128x128xf32>
    tpu.vector_store %arg17[%c0_50, %c0_51], %109 {strides = array<i32>} : memref<128x128xf32, #tpu.memory_space<vmem>>, vector<128x128xf32>,
    return
  }
  func.func @transform_0(%arg0: i32) -> (i32, i32) {
    %c0_i32 = arith.constant 0 : i32
    %c0_i32_0 = arith.constant 0 : i32
    return %arg0, %c0_i32 : i32, i32
  }
  func.func @transform_1(%arg0: i32) -> (i32, i32) {
    %c0_i32 = arith.constant 0 : i32
    %c0_i32_0 = arith.constant 0 : i32
    return %arg0, %c0_i32 : i32, i32
  }
  func.func @transform_2(%arg0: i32) -> (i32, i32) {
    %c0_i32 = arith.constant 0 : i32
    %c0_i32_0 = arith.constant 0 : i32
    %c0_i32_1 = arith.constant 0 : i32
    return %c0_i32, %c0_i32_0 : i32, i32
  }
  func.func @transform_3(%arg0: i32) -> (i32, i32) {
    %c0_i32 = arith.constant 0 : i32
    %c0_i32_0 = arith.constant 0 : i32
    %c0_i32_1 = arith.constant 0 : i32
    return %c0_i32, %c0_i32_0 : i32, i32
  }
  func.func @transform_4(%arg0: i32) -> (i32, i32) {
    %c0_i32 = arith.constant 0 : i32
    %c0_i32_0 = arith.constant 0 : i32
    %c0_i32_1 = arith.constant 0 : i32
    return %c0_i32, %c0_i32_0 : i32, i32
  }
  func.func @transform_5(%arg0: i32) -> (i32, i32) {
    %c0_i32 = arith.constant 0 : i32
    %c0_i32_0 = arith.constant 0 : i32
    %c0_i32_1 = arith.constant 0 : i32
    return %c0_i32, %c0_i32_0 : i32, i32
  }
  func.func @transform_6(%arg0: i32) -> (i32, i32) {
    %c0_i32 = arith.constant 0 : i32
    %c0_i32_0 = arith.constant 0 : i32
    %c0_i32_1 = arith.constant 0 : i32
    return %c0_i32, %c0_i32_0 : i32, i32
  }
  func.func @transform_7(%arg0: i32) -> (i32, i32) {
    %c0_i32 = arith.constant 0 : i32
    %c0_i32_0 = arith.constant 0 : i32
    %c0_i32_1 = arith.constant 0 : i32
    return %c0_i32, %c0_i32_0 : i32, i32
  }
  func.func @transform_8(%arg0: i32) -> (i32, i32) {
    %c0_i32 = arith.constant 0 : i32
    %c0_i32_0 = arith.constant 0 : i32
    %c0_i32_1 = arith.constant 0 : i32
    return %c0_i32, %c0_i32_0 : i32, i32
  }
  func.func @transform_9(%arg0: i32) -> (i32, i32) {
    %c0_i32 = arith.constant 0 : i32
    %c0_i32_0 = arith.constant 0 : i32
    %c0_i32_1 = arith.constant 0 : i32
    return %c0_i32, %c0_i32_0 : i32, i32
  }
  func.func @transform_10(%arg0: i32) -> (i32, i32) {
    %c0_i32 = arith.constant 0 : i32
    %c0_i32_0 = arith.constant 0 : i32
    %c0_i32_1 = arith.constant 0 : i32
    return %c0_i32, %c0_i32_0 : i32, i32
  }
  func.func @transform_11(%arg0: i32) -> (i32, i32) {
    %c0_i32 = arith.constant 0 : i32
    %c0_i32_0 = arith.constant 0 : i32
    %c0_i32_1 = arith.constant 0 : i32
    return %c0_i32, %c0_i32_0 : i32, i32
  }
  func.func @transform_12(%arg0: i32) -> (i32, i32) {
    %c0_i32 = arith.constant 0 : i32
    %c0_i32_0 = arith.constant 0 : i32
    %c0_i32_1 = arith.constant 0 : i32
    return %c0_i32, %c0_i32_0 : i32, i32
  }
  func.func @transform_13(%arg0: i32) -> (i32, i32) {
    %c0_i32 = arith.constant 0 : i32
    %c0_i32_0 = arith.constant 0 : i32
    %c0_i32_1 = arith.constant 0 : i32
    return %c0_i32, %c0_i32_0 : i32, i32
  }
  func.func @transform_14(%arg0: i32) -> (i32, i32) {
    %c0_i32 = arith.constant 0 : i32
    %c0_i32_0 = arith.constant 0 : i32
    %c0_i32_1 = arith.constant 0 : i32
    return %c0_i32, %c0_i32_0 : i32, i32
  }
  func.func @transform_15(%arg0: i32) -> (i32, i32) {
    %c0_i32 = arith.constant 0 : i32
    %c0_i32_0 = arith.constant 0 : i32
    %c0_i32_1 = arith.constant 0 : i32
    return %c0_i32, %c0_i32_0 : i32, i32
  }
  func.func @transform_16(%arg0: i32) -> (i32, i32) {
    %c0_i32 = arith.constant 0 : i32
    %c0_i32_0 = arith.constant 0 : i32
    return %arg0, %c0_i32 : i32, i32
  }
}

</mosaic_0001>

<bundles_post_ra>
// kernel: tpu_custom_call.1
= control target key start
LH: loop header
LB: loop body
LE: loop exit
PB: predicated region body
PF: predicated region fallthrough
CT: control target
= control target key end

     0   :  { %s4165_s0 = inlined_call_operand.vmem [shape: bf16[128,16], index: 0, kind: input, shape index: {}]   ;;  %s4166_s1 = inlined_call_operand.vmem [shape: s8[128,128], index: 1, kind: input, shape index: {}]   ;;  %s4167_s2 = inlined_call_operand.hbm [shape: bf16[16,32], index: 2, kind: input, shape index: {}]   ;;  %s4168_s3 = inlined_call_operand.vmem [shape: f32[1,32], index: 3, kind: input, shape index: {}]   ;;  %s4169_s4 = inlined_call_operand.vmem [shape: bf16[32,32], index: 4, kind: input, shape index: {}]   ;;  %s4170_s5 = inlined_call_operand.hbm [shape: f32[1,32], index: 5, kind: input, shape index: {}]   ;;  %s4171_s6 = inlined_call_operand.vmem [shape: bf16[32,32], index: 6, kind: input, shape index: {}]   ;;  %s4172_s7 = inlined_call_operand.hbm [shape: f32[1,32], index: 7, kind: input, shape index: {}]   ;;  %s4173_s8 = inlined_call_operand.vmem [shape: bf16[32,32], index: 8, kind: input, shape index: {}]   ;;  %s4174_s9 = inlined_call_operand.hbm [shape: f32[1,32], index: 9, kind: input, shape index: {}]   ;;  %s4175_s10 = inlined_call_operand.vmem [shape: bf16[32,32], index: 10, kind: input, shape index: {}]   ;;  %s4176_s11 = inlined_call_operand.hbm [shape: f32[1,32], index: 11, kind: input, shape index: {}]   ;;  %s4177_s12 = inlined_call_operand.vmem [shape: bf16[32,128], index: 12, kind: input, shape index: {}]   ;;  %s4178_s13 = inlined_call_operand.vmem [shape: f32[1,128], index: 13, kind: input, shape index: {}]   ;;  %s4179_s14 = inlined_call_operand.vmem [shape: f32[1,32], index: 14, kind: input, shape index: {}]   ;;  %s4180_s15 = inlined_call_operand.vmem [shape: f32[1,32], index: 15, kind: input, shape index: {}]   ;;  %s4181_s16 = inlined_call_operand.hbm [shape: f32[128,128], index: 16, kind: output, shape index: {}]  }
   0x1   :  { %4183 = sst [smem:[#allocation16_spill]] %s4165_s0 }
   0x2   :  { %21 = vsyncpa [#allocation3], 0 }
   0x3   :  { %22 = vsyncpa [#allocation6], 0 }
   0x4   :  { %23 = vsyncpa [#allocation9], 0 }
   0x5   :  { %24 = vsyncpa [#allocation4], 0  ;;  %s3051_s21 = smov [#allocation5]   ;;  %s3052_s23 = smov [#allocation8]  }
   0x6   :  { %s51_s22 = sshll.u32 %s3051_s21, 4  ;;  %s75_s24 = sshll.u32 %s3052_s23, 4  ;;  %s52_s22 = int_to_ptr.vmem [resolvable:$true] %s51_s22  ;;  %s76_s24 = int_to_ptr.vmem [resolvable:$true] %s75_s24 }
   0x7   :  { %s2911_s27 = scalar_lea.hbm %s4170_s5, 16 }
   0x8   :  { %p2912_p0 = scmp.ne.s32.totalorder %s4170_s5, %s2911_s27  ;;  %p2915_p1 = scmp.lt.u32.totalorder %s2911_s27, %s4170_s5 }
   0xa   :  { %p2917_p2 = pnand %p2915_p1, %p2912_p0 }
   0xc   :  { %2920 = shalt.err (!%p2917_p2)
}
   0xd   :  { %s2921_s17 = scalar_lea.vmem %s52_s22, 16  ;;  %s2925_s18 = scalar_lea.vmem %s52_s22, 32 }
   0xe   :  { %p2922_p3 = scmp.ne.s32.totalorder %s52_s22, %s2921_s17  ;;  %p2926_p4 = scmp.lt.s32.totalorder %s52_s22, %s52_s22 }
   0xf   :  { %p2927_p5 = scmp.lt.s32.totalorder %s2925_s18, %s2921_s17 }
  0x11   :  { %p2928_p6 = por %p2927_p5, %p2926_p4 }
  0x13   :  { %p2929_p7 = pnand %p2928_p6, %p2922_p3 }
  0x15   :  { %2932 = shalt.err (!%p2929_p7)
}
  0x16   :  { %54 = dma.hbm_to_vmem [thread:$0]  %s4170_s5, 16, %s52_s22, [#allocation6]  }
  0x17   :  { %s2933_s25 = scalar_lea.hbm %s4174_s9, 16 }
  0x18   :  { %p2934_p8 = scmp.ne.s32.totalorder %s4174_s9, %s2933_s25  ;;  %p2937_p9 = scmp.lt.u32.totalorder %s2933_s25, %s4174_s9 }
  0x1a   :  { %p2939_p10 = pnand %p2937_p9, %p2934_p8 }
  0x1c   :  { %2942 = shalt.err (!%p2939_p10)
}
  0x1d   :  { %s2943_s30 = scalar_lea.vmem %s76_s24, 16  ;;  %s2947_s0 = scalar_lea.vmem %s76_s24, 32 }
  0x1e   :  { %p2944_p11 = scmp.ne.s32.totalorder %s76_s24, %s2943_s30  ;;  %p2948_p12 = scmp.lt.s32.totalorder %s76_s24, %s76_s24 }
  0x1f   :  { %p2949_p13 = scmp.lt.s32.totalorder %s2947_s0, %s2943_s30 }
  0x21   :  { %p2950_p0 = por %p2949_p13, %p2948_p12 }
  0x23   :  { %p2951_p1 = pnand %p2950_p0, %p2944_p11 }
  0x25   :  { %2954 = shalt.err (!%p2951_p1)
}
  0x26   :  { %78 = dma.hbm_to_vmem [thread:$0]  %s4174_s9, 16, %s76_s24, [#allocation9]  }
  0x27   :  { %s3053_s17 = smov [#allocation2]   ;;  %s2955_s21 = scalar_lea.hbm %s4167_s2, 128 }
  0x28   :  { %s34_s18 = sshll.u32 %s3053_s17, 4  ;;  %p2956_p2 = scmp.ne.s32.totalorder %s4167_s2, %s2955_s21  ;;  %s35_s18 = int_to_ptr.vmem [resolvable:$true] %s34_s18 }
  0x29   :  { %p2959_p3 = scmp.lt.u32.totalorder %s2955_s21, %s4167_s2 }
  0x2b   :  { %p2961_p4 = pnand %p2959_p3, %p2956_p2 }
  0x2d   :  { %2964 = shalt.err (!%p2961_p4)
}
  0x2e   :  { %s2965_s28 = scalar_lea.vmem %s35_s18, 128  ;;  %p2970_p6 = scmp.lt.s32.totalorder %s35_s18, %s35_s18 }
  0x2f   :  { %p2966_p5 = scmp.ne.s32.totalorder %s35_s18, %s2965_s28  ;;  %p2971_p7 = scmp.lt.s32.totalorder %s2965_s28, %s2965_s28 }
  0x31   :  { %p2972_p8 = por %p2971_p7, %p2970_p6 }
  0x33   :  { %p2973_p9 = pnand %p2972_p8, %p2966_p5 }
  0x35   :  { %2976 = shalt.err (!%p2973_p9)
}
  0x36   :  { %s3054_s9 = smov 64   ;;  %s3055_s24 = smov 4  }
  0x37   :  { %40 = dma.hbm_to_vmem [thread:$0]  %s4167_s2, 128, %s35_s18, [#allocation3], %s3054_s9, %s3054_s9, %s3055_s24  }
  0x38   :  { %s3056_s0 = smov [#allocation7]   ;;  %s3057_s22 = smov [#allocation10]  }
  0x39   :  { %s63_s5 = sshll.u32 %s3056_s0, 4  ;;  %s87_s17 = sshll.u32 %s3057_s22, 4  ;;  %s64_s5 = int_to_ptr.vmem [resolvable:$true] %s63_s5  ;;  %s88_s17 = int_to_ptr.vmem [resolvable:$true] %s87_s17 }
  0x3a   :  { %s2977_s21 = scalar_lea.hbm %s4172_s7, 16 }
  0x3b   :  { %p2978_p10 = scmp.ne.s32.totalorder %s4172_s7, %s2977_s21  ;;  %p2981_p11 = scmp.lt.u32.totalorder %s2977_s21, %s4172_s7 }
  0x3d   :  { %p2983_p12 = pnand %p2981_p11, %p2978_p10 }
  0x3f   :  { %2986 = shalt.err (!%p2983_p12)
}
  0x40   :  { %s2987_s2 = scalar_lea.vmem %s64_s5, 16  ;;  %s2991_s18 = scalar_lea.vmem %s64_s5, 32 }
  0x41   :  { %p2988_p13 = scmp.ne.s32.totalorder %s64_s5, %s2987_s2  ;;  %p2992_p0 = scmp.lt.s32.totalorder %s64_s5, %s64_s5 }
  0x42   :  { %p2993_p1 = scmp.lt.s32.totalorder %s2991_s18, %s2987_s2 }
  0x44   :  { %p2994_p2 = por %p2993_p1, %p2992_p0 }
  0x46   :  { %p2995_p3 = pnand %p2994_p2, %p2988_p13 }
  0x48   :  { %2998 = shalt.err (!%p2995_p3)
}
  0x49   :  { %66 = dma.hbm_to_vmem [thread:$0]  %s4172_s7, 16, %s64_s5, [#allocation6]  }
  0x4a   :  { %s2999_s30 = scalar_lea.hbm %s4176_s11, 16 }
  0x4b   :  { %p3000_p4 = scmp.ne.s32.totalorder %s4176_s11, %s2999_s30  ;;  %p3003_p5 = scmp.lt.u32.totalorder %s2999_s30, %s4176_s11 }
  0x4d   :  { %p3005_p6 = pnand %p3003_p5, %p3000_p4 }
  0x4f   :  { %3008 = shalt.err (!%p3005_p6)
}
  0x50   :  { %s3009_s21 = scalar_lea.vmem %s88_s17, 16  ;;  %s3013_s23 = scalar_lea.vmem %s88_s17, 32 }
  0x51   :  { %p3010_p7 = scmp.ne.s32.totalorder %s88_s17, %s3009_s21  ;;  %p3014_p8 = scmp.lt.s32.totalorder %s88_s17, %s88_s17 }
  0x52   :  { %p3015_p9 = scmp.lt.s32.totalorder %s3013_s23, %s3009_s21 }
  0x54   :  { %p3016_p10 = por %p3015_p9, %p3014_p8 }
  0x56   :  { %p3017_p11 = pnand %p3016_p10, %p3010_p7 }
  0x58   :  { %3020 = shalt.err (!%p3017_p11)
}
  0x59   :  { %90 = dma.hbm_to_vmem [thread:$0]  %s4176_s11, 16, %s88_s17, [#allocation9]  }
  0x5a   :  { %3043 = dma.done.wait [#allocation3], 128  }
  0x5b   :  { %3044 = vsyncadd [#allocation3], 4294967168 }
  0x5c   :  { %3045 = dma.done.wait [#allocation6], 32  }
  0x5d   :  { %3046 = vsyncadd [#allocation6], 4294967264 }
  0x5e   :  { %3047 = dma.done.wait [#allocation9], 32  }
  0x5f   :  { %3048 = vsyncadd [#allocation9], 4294967264  ;;  %v2476_v0 = vld [vmem:[#allocation2] sm:$0xff]   ;;  %vm186_vm0 = vcmask 130048   ;;  %s4184_s27 = sld [smem:[#allocation16_spill]]  ;;  %v2485_v9 = vld [vmem:[%s4169_s4] sm:$0xff]  }
  0x60   :  { %2348 = vmatprep.subr.bf16.mxu0 %v2476_v0  ;;  %2366 = vmatprep.subr.bf16.mxu1 %v2485_v9  ;;  %v2486_v10 = vld [vmem:[%s4169_s4 + $0x8] sm:$0xff]   ;;  %v3247_v11 = vld [vmem:[%s4168_s3] ss:$0 sm:$0xff]  ;;  %vm451_vm1 = vcmask 261120  }
  0x61   :  { %2349 = vmatpush3.bf16.msra.mxu0 %v2476_v0  ;;  %2367 = vmatpush3.bf16.msra.mxu1 %v2485_v9 }
  0x62   :  { %2368 = vmatprep.subr.bf16.mxu1 %v2486_v10 }
  0x65   :  { %v2477_v1 = vld [vmem:[%s4184_s27] sm:$0xff]   ;;  %v2478_v2 = vld [vmem:[%s4184_s27 + $0x8] sm:$0xff]   ;;  %v2479_v3 = vld [vmem:[%s4184_s27 + $0x10] sm:$0xff]   ;;  %2369 = vmatpush3.bf16.msra.mxu1 %v2486_v10 }
  0x66   :  { %2350 = vmatprep.mubr.msk.bf16.mxu0 %vm186_vm0, %v2477_v1  ;;  %v2480_v4 = vld [vmem:[%s4184_s27 + $0x18] sm:$0xff]   ;;  %v2481_v5 = vld [vmem:[%s4184_s27 + $0x20] sm:$0xff]   ;;  %v2482_v6 = vld [vmem:[%s4184_s27 + $0x28] sm:$0xff]  }
  0x67   :  { %2351 = vmatmul.mubr.msk.bf16.vlgmr.msra.gmra.mrb[0].mxu0 %vm186_vm0, %v2478_v2  ;;  %v2483_v7 = vld [vmem:[%s4184_s27 + $0x30] sm:$0xff]   ;;  %v2484_v8 = vld [vmem:[%s4184_s27 + $0x38] sm:$0xff]  }
  0x68   :  { %2354 = vmatprep.mubr.msk.bf16.mxu0 %vm186_vm0, %v2479_v3 }
  0x6f   :  { %2355 = vmatmul.mubr.msk.bf16.gmra.mrb[4].mxu0 %vm186_vm0, %v2480_v4 }
  0x70   :  { %2358 = vmatprep.mubr.msk.bf16.mxu0 %vm186_vm0, %v2481_v5 }
  0x77   :  { %2359 = vmatmul.mubr.msk.bf16.gmra.mrb[8].mxu0 %vm186_vm0, %v2482_v6 }
  0x78   :  { %2362 = vmatprep.mubr.msk.bf16.mxu0 %vm186_vm0, %v2483_v7 }
  0x7f   :  { %2363 = vmatmul.mubr.msk.bf16.gmra.mrb[12].mxu0 %vm186_vm0, %v2484_v8 }
 0x13a   :  { %v2352_v12 = vpop.f32.mrb[0].mxu0 }
 0x13b   :  { %v3250_v13 = vadd.f32 %v2352_v12, %v3247_v11  ;;  %v245_v14 = vpop.f32.mrb[1].mxu0 }
 0x13c   :  { %v3253_v15 = vadd.f32 %v3247_v11, %v245_v14  ;;  %v2353_v16 = vpop.f32.mrb[2].mxu0 }
 0x13d   :  { %v2154_v17 = vmul.f32 -1.442695, %v3250_v13  ;;  %v3257_v18 = vadd.f32 %v2353_v16, %v3247_v11  ;;  %v248_v19 = vpop.f32.mrb[3].mxu0 }
 0x13e   :  { %v2152_v20 = vmul.f32 -1.442695, %v3253_v15  ;;  %v3261_v21 = vadd.f32 %v3247_v11, %v248_v19 }
 0x13f   :  { %2495 = vpow2.f32 %v2154_v17  ;;  %v2155_v22 = vmul.f32 -1.442695, %v3257_v18 }
 0x140   :  { %2497 = vpow2.f32 %v2152_v20  ;;  %v2153_v23 = vmul.f32 -1.442695, %v3261_v21 }
 0x141   :  { %2499 = vpow2.f32 %v2155_v22 }
 0x142   :  { %2501 = vpow2.f32 %v2153_v23  ;;  %v2356_v24 = vpop.f32.mrb[4].mxu0 }
 0x143   :  { %v3266_v25 = vadd.f32 %v2356_v24, %v3247_v11  ;;  %v261_v26 = vpop.f32.mrb[5].mxu0 }
 0x144   :  { %v3269_v27 = vadd.f32 %v3247_v11, %v261_v26  ;;  %v2357_v28 = vpop.f32.mrb[6].mxu0 }
 0x145   :  { %v2158_v29 = vmul.f32 -1.442695, %v3266_v25  ;;  %v3273_v30 = vadd.f32 %v2357_v28, %v3247_v11  ;;  %v264_v31 = vpop.f32.mrb[7].mxu0 }
 0x146   :  { %v2156_v32 = vmul.f32 -1.442695, %v3269_v27  ;;  %v3277_v33 = vadd.f32 %v3247_v11, %v264_v31 }
 0x147   :  { %2503 = vpow2.f32 %v2158_v29  ;;  %v2159_v34 = vmul.f32 -1.442695, %v3273_v30 }
 0x148   :  { %2505 = vpow2.f32 %v2156_v32  ;;  %v2157_v35 = vmul.f32 -1.442695, %v3277_v33 }
 0x149   :  { %v2496_v36 = vpop.eup %2495  ;;  %2507 = vpow2.f32 %v2159_v34 }
 0x14a   :  { %v2498_v37 = vpop.eup %2497  ;;  %v358_v38 = vadd.f32 1.0, %v2496_v36  ;;  %2509 = vpow2.f32 %v2157_v35  ;;  %v2360_v39 = vpop.f32.mrb[8].mxu0 }
 0x14b   :  { %v2500_v40 = vpop.eup %2499  ;;  %v356_v41 = vadd.f32 1.0, %v2498_v37  ;;  %v3282_v42 = vadd.f32 %v2360_v39, %v3247_v11  ;;  %v277_v43 = vpop.f32.mrb[9].mxu0 }
 0x14c   :  { %v2502_v44 = vpop.eup %2501  ;;  %2511 = vrcp.f32 %v358_v38  ;;  %v359_v45 = vadd.f32 1.0, %v2500_v40  ;;  %v3285_v46 = vadd.f32 %v3247_v11, %v277_v43  ;;  %v2361_v47 = vpop.f32.mrb[10].mxu0 }
 0x14d   :  { %2513 = vrcp.f32 %v356_v41  ;;  %v357_v48 = vadd.f32 1.0, %v2502_v44  ;;  %v2162_v49 = vmul.f32 -1.442695, %v3282_v42  ;;  %v3289_v50 = vadd.f32 %v2361_v47, %v3247_v11  ;;  %v280_v51 = vpop.f32.mrb[11].mxu0 }
 0x14e   :  { %2515 = vrcp.f32 %v359_v45  ;;  %v2160_v52 = vmul.f32 -1.442695, %v3285_v46  ;;  %v3293_v53 = vadd.f32 %v3247_v11, %v280_v51 }
 0x14f   :  { %2517 = vrcp.f32 %v357_v48  ;;  %v2163_v54 = vmul.f32 -1.442695, %v3289_v50 }
 0x150   :  { %2519 = vpow2.f32 %v2162_v49  ;;  %v2161_v55 = vmul.f32 -1.442695, %v3293_v53 }
 0x151   :  { %v2504_v56 = vpop.eup %2503  ;;  %2521 = vpow2.f32 %v2160_v52 }
 0x152   :  { %v2506_v57 = vpop.eup %2505  ;;  %v362_v58 = vadd.f32 1.0, %v2504_v56  ;;  %2523 = vpow2.f32 %v2163_v54  ;;  %v2364_v59 = vpop.f32.mrb[12].mxu0 }
 0x153   :  { %v2508_v60 = vpop.eup %2507  ;;  %v360_v61 = vadd.f32 1.0, %v2506_v57  ;;  %2525 = vpow2.f32 %v2161_v55  ;;  %v3298_v62 = vadd.f32 %v2364_v59, %v3247_v11  ;;  %v293_v63 = vpop.f32.mrb[13].mxu0 }
 0x154   :  { %v2510_v0 = vpop.eup %2509  ;;  %2527 = vrcp.f32 %v362_v58  ;;  %v363_v1 = vadd.f32 1.0, %v2508_v60  ;;  %v3301_v2 = vadd.f32 %v3247_v11, %v293_v63  ;;  %v2365_v3 = vpop.f32.mrb[14].mxu0 }
 0x155   :  { %2529 = vrcp.f32 %v360_v61  ;;  %v361_v4 = vadd.f32 1.0, %v2510_v0  ;;  %v2166_v5 = vmul.f32 -1.442695, %v3298_v62  ;;  %v3305_v6 = vadd.f32 %v2365_v3, %v3247_v11  ;;  %v296_v7 = vpop.f32.mrb[15].mxu0 }
 0x156   :  { %v2512_v8 = vpop.eup %2511  ;;  %2531 = vrcp.f32 %v363_v1  ;;  %v2164_v9 = vmul.f32 -1.442695, %v3301_v2  ;;  %v3309_v10 = vadd.f32 %v3247_v11, %v296_v7  ;;  %v2487_v7 = vld [vmem:[%s4171_s6] sm:$0xff]  }
 0x157   :  { %v2514_v12 = vpop.eup %2513  ;;  %2533 = vrcp.f32 %v361_v4  ;;  %v2167_v14 = vmul.f32 -1.442695, %v3305_v6  ;;  %v406_v20 = vmul.f32 %v2512_v8, %v3250_v13  ;;  %2386 = vmatprep.subr.bf16.mxu0 %v2487_v7 }
 0x158   :  { %v2516_v16 = vpop.eup %2515  ;;  %2535 = vpow2.f32 %v2166_v5  ;;  %v2165_v17 = vmul.f32 -1.442695, %v3309_v10  ;;  %v404_v24 = vmul.f32 %v2514_v12, %v3253_v15  ;;  %2387 = vmatpush3.bf16.msra.mxu0 %v2487_v7 }
 0x159   :  { %v2518_v19 = vpop.eup %2517  ;;  %v407_v22 = vmul.f32 %v2516_v16, %v3257_v18  ;;  %2537 = vpow2.f32 %v2164_v9 }
 0x15a   :  { %v2520_v23 = vpop.eup %2519  ;;  %v405_v11 = vmul.f32 %v2518_v19, %v3261_v21  ;;  %2539 = vpow2.f32 %v2167_v14 }
 0x15b   :  { %v2522_v26 = vpop.eup %2521  ;;  %v421_v28 = vpack.c.bf16 %v407_v22, %v406_v20  ;;  %v366_v29 = vadd.f32 1.0, %v2520_v23  ;;  %2541 = vpow2.f32 %v2165_v17 }
 0x15c   :  { %v2524_v31 = vpop.eup %2523  ;;  %v364_v32 = vadd.f32 1.0, %v2522_v26  ;;  %v420_v34 = vpack.c.bf16 %v405_v11, %v404_v24 }
 0x15d   :  { %v2526_v35 = vpop.eup %2525  ;;  %2543 = vrcp.f32 %v366_v29  ;;  %v367_v13 = vadd.f32 1.0, %v2524_v31 }
 0x15e   :  { %v2528_v36 = vpop.eup %2527  ;;  %2545 = vrcp.f32 %v364_v32  ;;  %v365_v18 = vadd.f32 1.0, %v2526_v35  ;;  %2370 = vmatprep.mubr.msk.bf16.mxu1 %vm451_vm1, %v420_v34 }
 0x15f   :  { %v2530_v15 = vpop.eup %2529  ;;  %2547 = vrcp.f32 %v367_v13  ;;  %2371 = vmatmul.mubr.msk.bf16.vlgmr.msra.gmra.mrb[0].mxu1 %vm451_vm1, %v421_v28  ;;  %v410_v38 = vmul.f32 %v2528_v36, %v3266_v25 }
 0x160   :  { %v2532_v21 = vpop.eup %2531  ;;  %2549 = vrcp.f32 %v365_v18  ;;  %v408_v41 = vmul.f32 %v2530_v15, %v3269_v27 }
 0x161   :  { %v2534_v37 = vpop.eup %2533  ;;  %v411_v39 = vmul.f32 %v2532_v21, %v3273_v30 }
 0x162   :  { %v2536_v40 = vpop.eup %2535  ;;  %v409_v43 = vmul.f32 %v2534_v37, %v3277_v33 }
 0x163   :  { %v2538_v44 = vpop.eup %2537  ;;  %v423_v45 = vpack.c.bf16 %v411_v39, %v410_v38  ;;  %v370_v47 = vadd.f32 1.0, %v2536_v40 }
 0x164   :  { %v2540_v48 = vpop.eup %2539  ;;  %v422_v49 = vpack.c.bf16 %v409_v43, %v408_v41  ;;  %v368_v51 = vadd.f32 1.0, %v2538_v44 }
 0x165   :  { %v2542_v52 = vpop.eup %2541  ;;  %2551 = vrcp.f32 %v370_v47  ;;  %v371_v54 = vadd.f32 1.0, %v2540_v48 }
 0x166   :  { %2553 = vrcp.f32 %v368_v51  ;;  %v369_v55 = vadd.f32 1.0, %v2542_v52  ;;  %2374 = vmatprep.mubr.msk.bf16.mxu1 %vm451_vm1, %v422_v49 }
 0x167   :  { %v2544_v25 = vpop.eup %2543  ;;  %2555 = vrcp.f32 %v371_v54  ;;  %2375 = vmatmul.mubr.msk.bf16.gmra.mrb[4].mxu1 %vm451_vm1, %v423_v45 }
 0x168   :  { %v2546_v27 = vpop.eup %2545  ;;  %2557 = vrcp.f32 %v369_v55  ;;  %v414_v56 = vmul.f32 %v2544_v25, %v3282_v42 }
 0x169   :  { %v2548_v30 = vpop.eup %2547  ;;  %v412_v58 = vmul.f32 %v2546_v27, %v3285_v46 }
 0x16a   :  { %v2550_v33 = vpop.eup %2549  ;;  %v415_v57 = vmul.f32 %v2548_v30, %v3289_v50 }
 0x16b   :  { %v413_v59 = vmul.f32 %v2550_v33, %v3293_v53 }
 0x16c   :  { %v425_v60 = vpack.c.bf16 %v415_v57, %v414_v56 }
 0x16d   :  { %v424_v61 = vpack.c.bf16 %v413_v59, %v412_v58 }
 0x16f   :  { %v2552_v63 = vpop.eup %2551  ;;  %2378 = vmatprep.mubr.msk.bf16.mxu1 %vm451_vm1, %v424_v61 }
 0x170   :  { %v2554_v0 = vpop.eup %2553  ;;  %2379 = vmatmul.mubr.msk.bf16.gmra.mrb[8].mxu1 %vm451_vm1, %v425_v60  ;;  %v418_v4 = vmul.f32 %v2552_v63, %v3298_v62  ;;  %v2488_v62 = vld [vmem:[%s4171_s6 + $0x8] sm:$0xff]  }
 0x171   :  { %v2556_v1 = vpop.eup %2555  ;;  %v416_v50 = vmul.f32 %v2554_v0, %v3301_v2  ;;  %2388 = vmatprep.subr.bf16.mxu0 %v2488_v62  ;;  %v3343_v2 = vld [vmem:[#allocation5] ss:$0 sm:$0xff] }
 0x172   :  { %v2558_v3 = vpop.eup %2557  ;;  %v419_v42 = vmul.f32 %v2556_v1, %v3305_v6  ;;  %2389 = vmatpush3.bf16.msra.mxu0 %v2488_v62 }
 0x173   :  { %v417_v46 = vmul.f32 %v2558_v3, %v3309_v10 }
 0x174   :  { %v427_v5 = vpack.c.bf16 %v419_v42, %v418_v4 }
 0x175   :  { %v426_v53 = vpack.c.bf16 %v417_v46, %v416_v50 }
 0x177   :  { %2382 = vmatprep.mubr.msk.bf16.mxu1 %vm451_vm1, %v426_v53 }
 0x178   :  { %2383 = vmatmul.mubr.msk.bf16.gmra.mrb[12].mxu1 %vm451_vm1, %v427_v5 }
 0x232   :  { %v2372_v6 = vpop.f32.mrb[0].mxu1 }
 0x233   :  { %v3346_v8 = vadd.f32 %v2372_v6, %v3343_v2  ;;  %v510_v9 = vpop.f32.mrb[1].mxu1 }
 0x234   :  { %v3349_v10 = vadd.f32 %v3343_v2, %v510_v9  ;;  %v2373_v12 = vpop.f32.mrb[2].mxu1 }
 0x235   :  { %v2181_v14 = vmul.f32 -1.442695, %v3346_v8  ;;  %v3353_v16 = vadd.f32 %v2373_v12, %v3343_v2  ;;  %v513_v17 = vpop.f32.mrb[3].mxu1 }
 0x236   :  { %v2179_v19 = vmul.f32 -1.442695, %v3349_v10  ;;  %v3357_v20 = vadd.f32 %v3343_v2, %v513_v17 }
 0x237   :  { %2559 = vpow2.f32 %v2181_v14  ;;  %v2182_v22 = vmul.f32 -1.442695, %v3353_v16 }
 0x238   :  { %2561 = vpow2.f32 %v2179_v19  ;;  %v2180_v23 = vmul.f32 -1.442695, %v3357_v20 }
 0x239   :  { %2563 = vpow2.f32 %v2182_v22 }
 0x23a   :  { %2565 = vpow2.f32 %v2180_v23  ;;  %v2376_v24 = vpop.f32.mrb[4].mxu1 }
 0x23b   :  { %v3362_v11 = vadd.f32 %v2376_v24, %v3343_v2  ;;  %v526_v26 = vpop.f32.mrb[5].mxu1 }
 0x23c   :  { %v3365_v28 = vadd.f32 %v3343_v2, %v526_v26  ;;  %v2377_v29 = vpop.f32.mrb[6].mxu1 }
 0x23d   :  { %v2185_v31 = vmul.f32 -1.442695, %v3362_v11  ;;  %v3369_v32 = vadd.f32 %v2377_v29, %v3343_v2  ;;  %v529_v34 = vpop.f32.mrb[7].mxu1 }
 0x23e   :  { %v2183_v35 = vmul.f32 -1.442695, %v3365_v28  ;;  %v3373_v13 = vadd.f32 %v3343_v2, %v529_v34 }
 0x23f   :  { %2567 = vpow2.f32 %v2185_v31  ;;  %v2186_v36 = vmul.f32 -1.442695, %v3369_v32 }
 0x240   :  { %2569 = vpow2.f32 %v2183_v35  ;;  %v2184_v18 = vmul.f32 -1.442695, %v3373_v13 }
 0x241   :  { %v2560_v15 = vpop.eup %2559  ;;  %2571 = vpow2.f32 %v2186_v36 }
 0x242   :  { %v2562_v21 = vpop.eup %2561  ;;  %v623_v37 = vadd.f32 1.0, %v2560_v15  ;;  %2573 = vpow2.f32 %v2184_v18 }
 0x243   :  { %v2564_v38 = vpop.eup %2563  ;;  %v621_v39 = vadd.f32 1.0, %v2562_v21  ;;  %v2380_v40 = vpop.f32.mrb[8].mxu1 }
 0x244   :  { %v2566_v41 = vpop.eup %2565  ;;  %2575 = vrcp.f32 %v623_v37  ;;  %v624_v43 = vadd.f32 1.0, %v2564_v38  ;;  %v3378_v44 = vadd.f32 %v2380_v40, %v3343_v2  ;;  %v542_v45 = vpop.f32.mrb[9].mxu1 }
 0x245   :  { %2577 = vrcp.f32 %v621_v39  ;;  %v622_v47 = vadd.f32 1.0, %v2566_v41  ;;  %v3381_v48 = vadd.f32 %v3343_v2, %v542_v45  ;;  %v2381_v49 = vpop.f32.mrb[10].mxu1 }
 0x246   :  { %2579 = vrcp.f32 %v624_v43  ;;  %v2189_v51 = vmul.f32 -1.442695, %v3378_v44  ;;  %v3385_v52 = vadd.f32 %v2381_v49, %v3343_v2  ;;  %v545_v54 = vpop.f32.mrb[11].mxu1 }
 0x247   :  { %2581 = vrcp.f32 %v622_v47  ;;  %v2187_v55 = vmul.f32 -1.442695, %v3381_v48  ;;  %v3389_v25 = vadd.f32 %v3343_v2, %v545_v54 }
 0x248   :  { %2583 = vpow2.f32 %v2189_v51  ;;  %v2190_v27 = vmul.f32 -1.442695, %v3385_v52 }
 0x249   :  { %v2568_v30 = vpop.eup %2567  ;;  %2585 = vpow2.f32 %v2187_v55  ;;  %v2188_v33 = vmul.f32 -1.442695, %v3389_v25 }
 0x24a   :  { %v2570_v56 = vpop.eup %2569  ;;  %v627_v57 = vadd.f32 1.0, %v2568_v30  ;;  %2587 = vpow2.f32 %v2190_v27 }
 0x24b   :  { %v2572_v58 = vpop.eup %2571  ;;  %v625_v59 = vadd.f32 1.0, %v2570_v56  ;;  %2589 = vpow2.f32 %v2188_v33  ;;  %v2384_v60 = vpop.f32.mrb[12].mxu1 }
 0x24c   :  { %v2574_v61 = vpop.eup %2573  ;;  %2591 = vrcp.f32 %v627_v57  ;;  %v628_v63 = vadd.f32 1.0, %v2572_v58  ;;  %v3394_v0 = vadd.f32 %v2384_v60, %v3343_v2  ;;  %v558_v1 = vpop.f32.mrb[13].mxu1 }
 0x24d   :  { %2593 = vrcp.f32 %v625_v59  ;;  %v626_v3 = vadd.f32 1.0, %v2574_v61  ;;  %v3397_v4 = vadd.f32 %v3343_v2, %v558_v1  ;;  %v2385_v42 = vpop.f32.mrb[14].mxu1 }
 0x24e   :  { %v2576_v50 = vpop.eup %2575  ;;  %2595 = vrcp.f32 %v628_v63  ;;  %v2193_v46 = vmul.f32 -1.442695, %v3394_v0  ;;  %v3401_v5 = vadd.f32 %v2385_v42, %v3343_v2  ;;  %v561_v53 = vpop.f32.mrb[15].mxu1 }
 0x24f   :  { %v2578_v7 = vpop.eup %2577  ;;  %2597 = vrcp.f32 %v626_v3  ;;  %v2191_v62 = vmul.f32 -1.442695, %v3397_v4  ;;  %v3405_v6 = vadd.f32 %v3343_v2, %v561_v53  ;;  %v671_v17 = vmul.f32 %v2576_v50, %v3346_v8 }
 0x250   :  { %v2580_v9 = vpop.eup %2579  ;;  %2599 = vpow2.f32 %v2193_v46  ;;  %v2194_v12 = vmul.f32 -1.442695, %v3401_v5  ;;  %v669_v24 = vmul.f32 %v2578_v7, %v3349_v10  ;;  %v2489_v46 = vld [vmem:[%s4173_s8] sm:$0xff]  }
 0x251   :  { %v2582_v14 = vpop.eup %2581  ;;  %v672_v19 = vmul.f32 %v2580_v9, %v3353_v16  ;;  %2601 = vpow2.f32 %v2191_v62  ;;  %v2192_v22 = vmul.f32 -1.442695, %v3405_v6  ;;  %2406 = vmatprep.subr.bf16.mxu1 %v2489_v46 }
 0x252   :  { %v2584_v23 = vpop.eup %2583  ;;  %v670_v26 = vmul.f32 %v2582_v14, %v3357_v20  ;;  %2603 = vpow2.f32 %v2194_v12  ;;  %2407 = vmatpush3.bf16.msra.mxu1 %v2489_v46 }
 0x253   :  { %v2586_v2 = vpop.eup %2585  ;;  %v686_v29 = vpack.c.bf16 %v672_v19, %v671_v17  ;;  %v631_v31 = vadd.f32 1.0, %v2584_v23  ;;  %2605 = vpow2.f32 %v2192_v22 }
 0x254   :  { %v2588_v34 = vpop.eup %2587  ;;  %v685_v35 = vpack.c.bf16 %v670_v26, %v669_v24  ;;  %v629_v36 = vadd.f32 1.0, %v2586_v2 }
 0x255   :  { %v2590_v18 = vpop.eup %2589  ;;  %2607 = vrcp.f32 %v631_v31  ;;  %v632_v8 = vadd.f32 1.0, %v2588_v34 }
 0x256   :  { %v2592_v16 = vpop.eup %2591  ;;  %2609 = vrcp.f32 %v629_v36  ;;  %v630_v15 = vadd.f32 1.0, %v2590_v18  ;;  %2390 = vmatprep.mubr.msk.bf16.mxu0 %vm451_vm1, %v685_v35 }
 0x257   :  { %v2594_v21 = vpop.eup %2593  ;;  %2611 = vrcp.f32 %v632_v8  ;;  %2391 = vmatmul.mubr.msk.bf16.vlgmr.msra.gmra.mrb[16].mxu0 %vm451_vm1, %v686_v29  ;;  %v675_v37 = vmul.f32 %v2592_v16, %v3362_v11 }
 0x258   :  { %v2596_v10 = vpop.eup %2595  ;;  %2613 = vrcp.f32 %v630_v15  ;;  %v673_v40 = vmul.f32 %v2594_v21, %v3365_v28 }
 0x259   :  { %v2598_v20 = vpop.eup %2597  ;;  %v676_v38 = vmul.f32 %v2596_v10, %v3369_v32 }
 0x25a   :  { %v2600_v39 = vpop.eup %2599  ;;  %v674_v41 = vmul.f32 %v2598_v20, %v3373_v13 }
 0x25b   :  { %v2602_v43 = vpop.eup %2601  ;;  %v688_v45 = vpack.c.bf16 %v676_v38, %v675_v37  ;;  %v635_v47 = vadd.f32 1.0, %v2600_v39 }
 0x25c   :  { %v2604_v49 = vpop.eup %2603  ;;  %v687_v51 = vpack.c.bf16 %v674_v41, %v673_v40  ;;  %v633_v54 = vadd.f32 1.0, %v2602_v43 }
 0x25d   :  { %v2606_v55 = vpop.eup %2605  ;;  %2615 = vrcp.f32 %v635_v47  ;;  %v636_v27 = vadd.f32 1.0, %v2604_v49 }
 0x25e   :  { %2617 = vrcp.f32 %v633_v54  ;;  %v634_v30 = vadd.f32 1.0, %v2606_v55  ;;  %2394 = vmatprep.mubr.msk.bf16.mxu0 %vm451_vm1, %v687_v51 }
 0x25f   :  { %v2608_v11 = vpop.eup %2607  ;;  %2619 = vrcp.f32 %v636_v27  ;;  %2395 = vmatmul.mubr.msk.bf16.gmra.mrb[20].mxu0 %vm451_vm1, %v688_v45 }
 0x260   :  { %v2610_v28 = vpop.eup %2609  ;;  %2621 = vrcp.f32 %v634_v30  ;;  %v679_v33 = vmul.f32 %v2608_v11, %v3378_v44 }
 0x261   :  { %v2612_v32 = vpop.eup %2611  ;;  %v677_v57 = vmul.f32 %v2610_v28, %v3381_v48 }
 0x262   :  { %v2614_v13 = vpop.eup %2613  ;;  %v680_v56 = vmul.f32 %v2612_v32, %v3385_v52 }
 0x263   :  { %v678_v58 = vmul.f32 %v2614_v13, %v3389_v25 }
 0x264   :  { %v690_v59 = vpack.c.bf16 %v680_v56, %v679_v33 }
 0x265   :  { %v689_v60 = vpack.c.bf16 %v678_v58, %v677_v57 }
 0x267   :  { %v2616_v61 = vpop.eup %2615  ;;  %2398 = vmatprep.mubr.msk.bf16.mxu0 %vm451_vm1, %v689_v60 }
 0x268   :  { %v2618_v63 = vpop.eup %2617  ;;  %2399 = vmatmul.mubr.msk.bf16.gmra.mrb[24].mxu0 %vm451_vm1, %v690_v59  ;;  %v683_v42 = vmul.f32 %v2616_v61, %v3394_v0  ;;  %v2490_v0 = vld [vmem:[%s4173_s8 + $0x8] sm:$0xff]  }
 0x269   :  { %v2620_v1 = vpop.eup %2619  ;;  %v681_v52 = vmul.f32 %v2618_v63, %v3397_v4  ;;  %2408 = vmatprep.subr.bf16.mxu1 %v2490_v0  ;;  %v3439_v4 = vld [vmem:[#allocation7] ss:$0 sm:$0xff] }
 0x26a   :  { %v2622_v3 = vpop.eup %2621  ;;  %v684_v44 = vmul.f32 %v2620_v1, %v3401_v5  ;;  %2409 = vmatpush3.bf16.msra.mxu1 %v2490_v0 }
 0x26b   :  { %v682_v48 = vmul.f32 %v2622_v3, %v3405_v6 }
 0x26c   :  { %v692_v50 = vpack.c.bf16 %v684_v44, %v683_v42 }
 0x26d   :  { %v691_v25 = vpack.c.bf16 %v682_v48, %v681_v52 }
 0x26f   :  { %2402 = vmatprep.mubr.msk.bf16.mxu0 %vm451_vm1, %v691_v25 }
 0x270   :  { %2403 = vmatmul.mubr.msk.bf16.gmra.mrb[28].mxu0 %vm451_vm1, %v692_v50 }
 0x32a   :  { %v2392_v5 = vpop.f32.mrb[16].mxu0 }
 0x32b   :  { %v3442_v53 = vadd.f32 %v2392_v5, %v3439_v4  ;;  %v774_v7 = vpop.f32.mrb[17].mxu0 }
 0x32c   :  { %v3445_v62 = vadd.f32 %v3439_v4, %v774_v7  ;;  %v2393_v6 = vpop.f32.mrb[18].mxu0 }
 0x32d   :  { %v2208_v9 = vmul.f32 -1.442695, %v3442_v53  ;;  %v3449_v12 = vadd.f32 %v2393_v6, %v3439_v4  ;;  %v777_v14 = vpop.f32.mrb[19].mxu0 }
 0x32e   :  { %v2206_v17 = vmul.f32 -1.442695, %v3445_v62  ;;  %v3453_v19 = vadd.f32 %v3439_v4, %v777_v14 }
 0x32f   :  { %2623 = vpow2.f32 %v2208_v9  ;;  %v2209_v22 = vmul.f32 -1.442695, %v3449_v12 }
 0x330   :  { %2625 = vpow2.f32 %v2206_v17  ;;  %v2207_v23 = vmul.f32 -1.442695, %v3453_v19 }
 0x331   :  { %2627 = vpow2.f32 %v2209_v22 }
 0x332   :  { %2629 = vpow2.f32 %v2207_v23  ;;  %v2396_v24 = vpop.f32.mrb[20].mxu0 }
 0x333   :  { %v3458_v26 = vadd.f32 %v2396_v24, %v3439_v4  ;;  %v790_v2 = vpop.f32.mrb[21].mxu0 }
 0x334   :  { %v3461_v29 = vadd.f32 %v3439_v4, %v790_v2  ;;  %v2397_v31 = vpop.f32.mrb[22].mxu0 }
 0x335   :  { %v2212_v34 = vmul.f32 -1.442695, %v3458_v26  ;;  %v3465_v35 = vadd.f32 %v2397_v31, %v3439_v4  ;;  %v793_v36 = vpop.f32.mrb[23].mxu0 }
 0x336   :  { %v2210_v18 = vmul.f32 -1.442695, %v3461_v29  ;;  %v3469_v8 = vadd.f32 %v3439_v4, %v793_v36 }
 0x337   :  { %2631 = vpow2.f32 %v2212_v34  ;;  %v2213_v16 = vmul.f32 -1.442695, %v3465_v35 }
 0x338   :  { %2633 = vpow2.f32 %v2210_v18  ;;  %v2211_v15 = vmul.f32 -1.442695, %v3469_v8 }
 0x339   :  { %v2624_v21 = vpop.eup %2623  ;;  %2635 = vpow2.f32 %v2213_v16 }
 0x33a   :  { %v2626_v10 = vpop.eup %2625  ;;  %v887_v20 = vadd.f32 1.0, %v2624_v21  ;;  %2637 = vpow2.f32 %v2211_v15 }
 0x33b   :  { %v2628_v37 = vpop.eup %2627  ;;  %v885_v38 = vadd.f32 1.0, %v2626_v10  ;;  %v2400_v39 = vpop.f32.mrb[24].mxu0 }
 0x33c   :  { %v2630_v40 = vpop.eup %2629  ;;  %2639 = vrcp.f32 %v887_v20  ;;  %v888_v41 = vadd.f32 1.0, %v2628_v37  ;;  %v3474_v43 = vadd.f32 %v2400_v39, %v3439_v4  ;;  %v806_v45 = vpop.f32.mrb[25].mxu0 }
 0x33d   :  { %2641 = vrcp.f32 %v885_v38  ;;  %v886_v47 = vadd.f32 1.0, %v2630_v40  ;;  %v3477_v49 = vadd.f32 %v3439_v4, %v806_v45  ;;  %v2401_v51 = vpop.f32.mrb[26].mxu0 }
 0x33e   :  { %2643 = vrcp.f32 %v888_v41  ;;  %v2216_v54 = vmul.f32 -1.442695, %v3474_v43  ;;  %v3481_v55 = vadd.f32 %v2401_v51, %v3439_v4  ;;  %v809_v27 = vpop.f32.mrb[27].mxu0 }
 0x33f   :  { %2645 = vrcp.f32 %v886_v47  ;;  %v2214_v30 = vmul.f32 -1.442695, %v3477_v49  ;;  %v3485_v11 = vadd.f32 %v3439_v4, %v809_v27 }
 0x340   :  { %2647 = vpow2.f32 %v2216_v54  ;;  %v2217_v28 = vmul.f32 -1.442695, %v3481_v55 }
 0x341   :  { %v2632_v32 = vpop.eup %2631  ;;  %2649 = vpow2.f32 %v2214_v30  ;;  %v2215_v13 = vmul.f32 -1.442695, %v3485_v11 }
 0x342   :  { %v2634_v33 = vpop.eup %2633  ;;  %v891_v56 = vadd.f32 1.0, %v2632_v32  ;;  %2651 = vpow2.f32 %v2217_v28 }
 0x343   :  { %v2636_v57 = vpop.eup %2635  ;;  %v889_v58 = vadd.f32 1.0, %v2634_v33  ;;  %2653 = vpow2.f32 %v2215_v13  ;;  %v2404_v59 = vpop.f32.mrb[28].mxu0 }
 0x344   :  { %v2638_v60 = vpop.eup %2637  ;;  %2655 = vrcp.f32 %v891_v56  ;;  %v892_v61 = vadd.f32 1.0, %v2636_v57  ;;  %v3490_v63 = vadd.f32 %v2404_v59, %v3439_v4  ;;  %v822_v1 = vpop.f32.mrb[29].mxu0 }
 0x345   :  { %2657 = vrcp.f32 %v889_v58  ;;  %v890_v3 = vadd.f32 1.0, %v2638_v60  ;;  %v3493_v42 = vadd.f32 %v3439_v4, %v822_v1  ;;  %v2405_v44 = vpop.f32.mrb[30].mxu0 }
 0x346   :  { %v2640_v52 = vpop.eup %2639  ;;  %2659 = vrcp.f32 %v892_v61  ;;  %v2220_v48 = vmul.f32 -1.442695, %v3490_v63  ;;  %v3497_v50 = vadd.f32 %v2405_v44, %v3439_v4  ;;  %v825_v25 = vpop.f32.mrb[31].mxu0 }
 0x347   :  { %v2642_v46 = vpop.eup %2641  ;;  %2661 = vrcp.f32 %v890_v3  ;;  %v2218_v0 = vmul.f32 -1.442695, %v3493_v42  ;;  %v3501_v5 = vadd.f32 %v3439_v4, %v825_v25  ;;  %v935_v14 = vmul.f32 %v2640_v52, %v3442_v53 }
 0x348   :  { %v2644_v7 = vpop.eup %2643  ;;  %2663 = vpow2.f32 %v2220_v48  ;;  %v2221_v6 = vmul.f32 -1.442695, %v3497_v50  ;;  %v933_v24 = vmul.f32 %v2642_v46, %v3445_v62  ;;  %v2491_v48 = vld [vmem:[%s4175_s10] sm:$0xff]  }
 0x349   :  { %v2646_v9 = vpop.eup %2645  ;;  %v936_v17 = vmul.f32 %v2644_v7, %v3449_v12  ;;  %2665 = vpow2.f32 %v2218_v0  ;;  %v2219_v22 = vmul.f32 -1.442695, %v3501_v5  ;;  %2426 = vmatprep.subr.bf16.mxu0 %v2491_v48 }
 0x34a   :  { %v2648_v23 = vpop.eup %2647  ;;  %v934_v2 = vmul.f32 %v2646_v9, %v3453_v19  ;;  %2667 = vpow2.f32 %v2221_v6  ;;  %2427 = vmatpush3.bf16.msra.mxu0 %v2491_v48 }
 0x34b   :  { %v2650_v4 = vpop.eup %2649  ;;  %v950_v31 = vpack.c.bf16 %v936_v17, %v935_v14  ;;  %v895_v34 = vadd.f32 1.0, %v2648_v23  ;;  %2669 = vpow2.f32 %v2219_v22 }
 0x34c   :  { %v2652_v36 = vpop.eup %2651  ;;  %v949_v18 = vpack.c.bf16 %v934_v2, %v933_v24  ;;  %v893_v16 = vadd.f32 1.0, %v2650_v4 }
 0x34d   :  { %v2654_v15 = vpop.eup %2653  ;;  %2671 = vrcp.f32 %v895_v34  ;;  %v896_v53 = vadd.f32 1.0, %v2652_v36 }
 0x34e   :  { %v2656_v12 = vpop.eup %2655  ;;  %2673 = vrcp.f32 %v893_v16  ;;  %v894_v21 = vadd.f32 1.0, %v2654_v15  ;;  %2410 = vmatprep.mubr.msk.bf16.mxu1 %vm451_vm1, %v949_v18 }
 0x34f   :  { %v2658_v10 = vpop.eup %2657  ;;  %2675 = vrcp.f32 %v896_v53  ;;  %2411 = vmatmul.mubr.msk.bf16.vlgmr.msra.gmra.mrb[16].mxu1 %vm451_vm1, %v950_v31  ;;  %v939_v20 = vmul.f32 %v2656_v12, %v3458_v26 }
 0x350   :  { %v2660_v62 = vpop.eup %2659  ;;  %2677 = vrcp.f32 %v894_v21  ;;  %v937_v39 = vmul.f32 %v2658_v10, %v3461_v29 }
 0x351   :  { %v2662_v19 = vpop.eup %2661  ;;  %v940_v37 = vmul.f32 %v2660_v62, %v3465_v35 }
 0x352   :  { %v2664_v38 = vpop.eup %2663  ;;  %v938_v40 = vmul.f32 %v2662_v19, %v3469_v8 }
 0x353   :  { %v2666_v41 = vpop.eup %2665  ;;  %v952_v45 = vpack.c.bf16 %v940_v37, %v939_v20  ;;  %v899_v47 = vadd.f32 1.0, %v2664_v38 }
 0x354   :  { %v2668_v51 = vpop.eup %2667  ;;  %v951_v54 = vpack.c.bf16 %v938_v40, %v937_v39  ;;  %v897_v27 = vadd.f32 1.0, %v2666_v41 }
 0x355   :  { %v2670_v30 = vpop.eup %2669  ;;  %2679 = vrcp.f32 %v899_v47  ;;  %v900_v28 = vadd.f32 1.0, %v2668_v51 }
 0x356   :  { %2681 = vrcp.f32 %v897_v27  ;;  %v898_v32 = vadd.f32 1.0, %v2670_v30  ;;  %2414 = vmatprep.mubr.msk.bf16.mxu1 %vm451_vm1, %v951_v54 }
 0x357   :  { %v2672_v26 = vpop.eup %2671  ;;  %2683 = vrcp.f32 %v900_v28  ;;  %2415 = vmatmul.mubr.msk.bf16.gmra.mrb[20].mxu1 %vm451_vm1, %v952_v45 }
 0x358   :  { %v2674_v29 = vpop.eup %2673  ;;  %2685 = vrcp.f32 %v898_v32  ;;  %v943_v13 = vmul.f32 %v2672_v26, %v3474_v43 }
 0x359   :  { %v2676_v35 = vpop.eup %2675  ;;  %v941_v56 = vmul.f32 %v2674_v29, %v3477_v49 }
 0x35a   :  { %v2678_v8 = vpop.eup %2677  ;;  %v944_v33 = vmul.f32 %v2676_v35, %v3481_v55 }
 0x35b   :  { %v942_v57 = vmul.f32 %v2678_v8, %v3485_v11 }
 0x35c   :  { %v954_v58 = vpack.c.bf16 %v944_v33, %v943_v13 }
 0x35d   :  { %v953_v59 = vpack.c.bf16 %v942_v57, %v941_v56 }
 0x35f   :  { %v2680_v60 = vpop.eup %2679  ;;  %2418 = vmatprep.mubr.msk.bf16.mxu1 %vm451_vm1, %v953_v59 }
 0x360   :  { %v2682_v61 = vpop.eup %2681  ;;  %2419 = vmatmul.mubr.msk.bf16.gmra.mrb[24].mxu1 %vm451_vm1, %v954_v58  ;;  %v947_v44 = vmul.f32 %v2680_v60, %v3490_v63  ;;  %v2492_v63 = vld [vmem:[%s4175_s10 + $0x8] sm:$0xff]  }
 0x361   :  { %v2684_v1 = vpop.eup %2683  ;;  %v945_v55 = vmul.f32 %v2682_v61, %v3493_v42  ;;  %2428 = vmatprep.subr.bf16.mxu0 %v2492_v63  ;;  %v3535_v42 = vld [vmem:[#allocation8] ss:$0 sm:$0xff] }
 0x362   :  { %v2686_v3 = vpop.eup %2685  ;;  %v948_v43 = vmul.f32 %v2684_v1, %v3497_v50  ;;  %2429 = vmatpush3.bf16.msra.mxu0 %v2492_v63 }
 0x363   :  { %v946_v49 = vmul.f32 %v2686_v3, %v3501_v5 }
 0x364   :  { %v956_v52 = vpack.c.bf16 %v948_v43, %v947_v44 }
 0x365   :  { %v955_v11 = vpack.c.bf16 %v946_v49, %v945_v55 }
 0x367   :  { %2422 = vmatprep.mubr.msk.bf16.mxu1 %vm451_vm1, %v955_v11 }
 0x368   :  { %2423 = vmatmul.mubr.msk.bf16.gmra.mrb[28].mxu1 %vm451_vm1, %v956_v52 }
 0x422   :  { %v2412_v50 = vpop.f32.mrb[16].mxu1 }
 0x423   :  { %v3538_v25 = vadd.f32 %v2412_v50, %v3535_v42  ;;  %v1038_v46 = vpop.f32.mrb[17].mxu1 }
 0x424   :  { %v3541_v0 = vadd.f32 %v3535_v42, %v1038_v46  ;;  %v2413_v5 = vpop.f32.mrb[18].mxu1 }
 0x425   :  { %v2235_v7 = vmul.f32 -1.442695, %v3538_v25  ;;  %v3545_v6 = vadd.f32 %v2413_v5, %v3535_v42  ;;  %v1041_v9 = vpop.f32.mrb[19].mxu1 }
 0x426   :  { %v2233_v14 = vmul.f32 -1.442695, %v3541_v0  ;;  %v3549_v17 = vadd.f32 %v3535_v42, %v1041_v9 }
 0x427   :  { %2687 = vpow2.f32 %v2235_v7  ;;  %v2236_v22 = vmul.f32 -1.442695, %v3545_v6 }
 0x428   :  { %2689 = vpow2.f32 %v2233_v14  ;;  %v2234_v23 = vmul.f32 -1.442695, %v3549_v17 }
 0x429   :  { %2691 = vpow2.f32 %v2236_v22 }
 0x42a   :  { %2693 = vpow2.f32 %v2234_v23  ;;  %v2416_v24 = vpop.f32.mrb[20].mxu1 }
 0x42b   :  { %v3554_v2 = vadd.f32 %v2416_v24, %v3535_v42  ;;  %v1054_v4 = vpop.f32.mrb[21].mxu1 }
 0x42c   :  { %v3557_v31 = vadd.f32 %v3535_v42, %v1054_v4  ;;  %v2417_v34 = vpop.f32.mrb[22].mxu1 }
 0x42d   :  { %v2239_v36 = vmul.f32 -1.442695, %v3554_v2  ;;  %v3561_v18 = vadd.f32 %v2417_v34, %v3535_v42  ;;  %v1057_v16 = vpop.f32.mrb[23].mxu1 }
 0x42e   :  { %v2237_v15 = vmul.f32 -1.442695, %v3557_v31  ;;  %v3565_v53 = vadd.f32 %v3535_v42, %v1057_v16 }
 0x42f   :  { %2695 = vpow2.f32 %v2239_v36  ;;  %v2240_v12 = vmul.f32 -1.442695, %v3561_v18 }
 0x430   :  { %2697 = vpow2.f32 %v2237_v15  ;;  %v2238_v21 = vmul.f32 -1.442695, %v3565_v53 }
 0x431   :  { %v2688_v10 = vpop.eup %2687  ;;  %2699 = vpow2.f32 %v2240_v12 }
 0x432   :  { %v2690_v62 = vpop.eup %2689  ;;  %v1151_v19 = vadd.f32 1.0, %v2688_v10  ;;  %2701 = vpow2.f32 %v2238_v21 }
 0x433   :  { %v2692_v20 = vpop.eup %2691  ;;  %v1149_v37 = vadd.f32 1.0, %v2690_v62  ;;  %v2420_v38 = vpop.f32.mrb[24].mxu1 }
 0x434   :  { %v2694_v39 = vpop.eup %2693  ;;  %2703 = vrcp.f32 %v1151_v19  ;;  %v1152_v40 = vadd.f32 1.0, %v2692_v20  ;;  %v3570_v41 = vadd.f32 %v2420_v38, %v3535_v42  ;;  %v1070_v45 = vpop.f32.mrb[25].mxu1 }
 0x435   :  { %2705 = vrcp.f32 %v1149_v37  ;;  %v1150_v47 = vadd.f32 1.0, %v2694_v39  ;;  %v3573_v51 = vadd.f32 %v3535_v42, %v1070_v45  ;;  %v2421_v54 = vpop.f32.mrb[26].mxu1 }
 0x436   :  { %2707 = vrcp.f32 %v1152_v40  ;;  %v2243_v27 = vmul.f32 -1.442695, %v3570_v41  ;;  %v3577_v30 = vadd.f32 %v2421_v54, %v3535_v42  ;;  %v1073_v28 = vpop.f32.mrb[27].mxu1 }
 0x437   :  { %2709 = vrcp.f32 %v1150_v47  ;;  %v2241_v32 = vmul.f32 -1.442695, %v3573_v51  ;;  %v3581_v26 = vadd.f32 %v3535_v42, %v1073_v28 }
 0x438   :  { %2711 = vpow2.f32 %v2243_v27  ;;  %v2244_v29 = vmul.f32 -1.442695, %v3577_v30 }
 0x439   :  { %v2696_v35 = vpop.eup %2695  ;;  %2713 = vpow2.f32 %v2241_v32  ;;  %v2242_v8 = vmul.f32 -1.442695, %v3581_v26 }
 0x43a   :  { %v2698_v13 = vpop.eup %2697  ;;  %v1155_v33 = vadd.f32 1.0, %v2696_v35  ;;  %2715 = vpow2.f32 %v2244_v29 }
 0x43b   :  { %v2700_v56 = vpop.eup %2699  ;;  %v1153_v57 = vadd.f32 1.0, %v2698_v13  ;;  %2717 = vpow2.f32 %v2242_v8  ;;  %v2424_v58 = vpop.f32.mrb[28].mxu1 }
 0x43c   :  { %v2702_v59 = vpop.eup %2701  ;;  %2719 = vrcp.f32 %v1155_v33  ;;  %v1156_v60 = vadd.f32 1.0, %v2700_v56  ;;  %v3586_v61 = vadd.f32 %v2424_v58, %v3535_v42  ;;  %v1086_v1 = vpop.f32.mrb[29].mxu1 }
 0x43d   :  { %2721 = vrcp.f32 %v1153_v57  ;;  %v1154_v3 = vadd.f32 1.0, %v2702_v59  ;;  %v3589_v44 = vadd.f32 %v3535_v42, %v1086_v1  ;;  %v2425_v43 = vpop.f32.mrb[30].mxu1 }
 0x43e   :  { %v2704_v55 = vpop.eup %2703  ;;  %2723 = vrcp.f32 %v1156_v60  ;;  %v2247_v49 = vmul.f32 -1.442695, %v3586_v61  ;;  %v3593_v52 = vadd.f32 %v2425_v43, %v3535_v42  ;;  %v1089_v11 = vpop.f32.mrb[31].mxu1 }
 0x43f   :  { %v2706_v48 = vpop.eup %2705  ;;  %2725 = vrcp.f32 %v1154_v3  ;;  %v2245_v63 = vmul.f32 -1.442695, %v3589_v44  ;;  %v3597_v50 = vadd.f32 %v3535_v42, %v1089_v11  ;;  %v1199_v9 = vmul.f32 %v2704_v55, %v3538_v25 }
 0x440   :  { %v2708_v46 = vpop.eup %2707  ;;  %2727 = vpow2.f32 %v2247_v49  ;;  %v2248_v5 = vmul.f32 -1.442695, %v3593_v52  ;;  %v1197_v24 = vmul.f32 %v2706_v48, %v3541_v0  ;;  %v2249_v49 = vld [vmem:[#allocation10] ss:$0 sm:$0xff] }
 0x441   :  { %v2710_v7 = vpop.eup %2709  ;;  %v1200_v14 = vmul.f32 %v2708_v46, %v3545_v6  ;;  %2729 = vpow2.f32 %v2245_v63  ;;  %v2246_v22 = vmul.f32 -1.442695, %v3597_v50 }
 0x442   :  { %v2712_v23 = vpop.eup %2711  ;;  %v1198_v4 = vmul.f32 %v2710_v7, %v3549_v17  ;;  %2731 = vpow2.f32 %v2248_v5 }
 0x443   :  { %v2714_v42 = vpop.eup %2713  ;;  %v1214_v34 = vpack.c.bf16 %v1200_v14, %v1199_v9  ;;  %v1159_v36 = vadd.f32 1.0, %v2712_v23  ;;  %2733 = vpow2.f32 %v2246_v22 }
 0x444   :  { %v2716_v16 = vpop.eup %2715  ;;  %v1213_v15 = vpack.c.bf16 %v1198_v4, %v1197_v24  ;;  %v1157_v12 = vadd.f32 1.0, %v2714_v42 }
 0x445   :  { %v2718_v21 = vpop.eup %2717  ;;  %2735 = vrcp.f32 %v1159_v36  ;;  %v1160_v25 = vadd.f32 1.0, %v2716_v16 }
 0x446   :  { %v2720_v6 = vpop.eup %2719  ;;  %2737 = vrcp.f32 %v1157_v12  ;;  %v1158_v10 = vadd.f32 1.0, %v2718_v21  ;;  %2430 = vmatprep.mubr.msk.bf16.mxu0 %vm451_vm1, %v1213_v15 }
 0x447   :  { %v2722_v62 = vpop.eup %2721  ;;  %2739 = vrcp.f32 %v1160_v25  ;;  %2431 = vmatmul.mubr.msk.bf16.vlgmr.msra.gmra.mrb[32].mxu0 %vm451_vm1, %v1214_v34  ;;  %v1203_v19 = vmul.f32 %v2720_v6, %v3554_v2 }
 0x448   :  { %v2724_v0 = vpop.eup %2723  ;;  %2741 = vrcp.f32 %v1158_v10  ;;  %v1201_v38 = vmul.f32 %v2722_v62, %v3557_v31 }
 0x449   :  { %v2726_v17 = vpop.eup %2725  ;;  %v1204_v20 = vmul.f32 %v2724_v0, %v3561_v18 }
 0x44a   :  { %v2728_v37 = vpop.eup %2727  ;;  %v1202_v39 = vmul.f32 %v2726_v17, %v3565_v53 }
 0x44b   :  { %v2730_v40 = vpop.eup %2729  ;;  %v1216_v45 = vpack.c.bf16 %v1204_v20, %v1203_v19  ;;  %v1163_v47 = vadd.f32 1.0, %v2728_v37 }
 0x44c   :  { %v2732_v54 = vpop.eup %2731  ;;  %v1215_v27 = vpack.c.bf16 %v1202_v39, %v1201_v38  ;;  %v1161_v28 = vadd.f32 1.0, %v2730_v40 }
 0x44d   :  { %v2734_v32 = vpop.eup %2733  ;;  %2743 = vrcp.f32 %v1163_v47  ;;  %v1164_v29 = vadd.f32 1.0, %v2732_v54 }
 0x44e   :  { %2745 = vrcp.f32 %v1161_v28  ;;  %v1162_v35 = vadd.f32 1.0, %v2734_v32  ;;  %2434 = vmatprep.mubr.msk.bf16.mxu0 %vm451_vm1, %v1215_v27 }
 0x44f   :  { %v2736_v2 = vpop.eup %2735  ;;  %2747 = vrcp.f32 %v1164_v29  ;;  %2435 = vmatmul.mubr.msk.bf16.gmra.mrb[36].mxu0 %vm451_vm1, %v1216_v45 }
 0x450   :  { %v2738_v31 = vpop.eup %2737  ;;  %2749 = vrcp.f32 %v1162_v35  ;;  %v1207_v8 = vmul.f32 %v2736_v2, %v3570_v41 }
 0x451   :  { %v2740_v18 = vpop.eup %2739  ;;  %v1205_v33 = vmul.f32 %v2738_v31, %v3573_v51 }
 0x452   :  { %v2742_v53 = vpop.eup %2741  ;;  %v1208_v13 = vmul.f32 %v2740_v18, %v3577_v30 }
 0x453   :  { %v1206_v56 = vmul.f32 %v2742_v53, %v3581_v26 }
 0x454   :  { %v1218_v57 = vpack.c.bf16 %v1208_v13, %v1207_v8 }
 0x455   :  { %v1217_v58 = vpack.c.bf16 %v1206_v56, %v1205_v33 }
 0x457   :  { %v2744_v59 = vpop.eup %2743  ;;  %2438 = vmatprep.mubr.msk.bf16.mxu0 %vm451_vm1, %v1217_v58 }
 0x458   :  { %v2746_v60 = vpop.eup %2745  ;;  %2439 = vmatmul.mubr.msk.bf16.gmra.mrb[40].mxu0 %vm451_vm1, %v1218_v57  ;;  %v1211_v43 = vmul.f32 %v2744_v59, %v3586_v61 }
 0x459   :  { %v2748_v1 = vpop.eup %2747  ;;  %v1209_v30 = vmul.f32 %v2746_v60, %v3589_v44 }
 0x45a   :  { %v2750_v3 = vpop.eup %2749  ;;  %v1212_v41 = vmul.f32 %v2748_v1, %v3593_v52 }
 0x45b   :  { %v1210_v51 = vmul.f32 %v2750_v3, %v3597_v50 }
 0x45c   :  { %v1220_v55 = vpack.c.bf16 %v1212_v41, %v1211_v43 }
 0x45d   :  { %v1219_v26 = vpack.c.bf16 %v1210_v51, %v1209_v30 }
 0x45f   :  { %2442 = vmatprep.mubr.msk.bf16.mxu0 %vm451_vm1, %v1219_v26 }
 0x460   :  { %2443 = vmatmul.mubr.msk.bf16.gmra.mrb[44].mxu0 %vm451_vm1, %v1220_v55 }
 0x51a   :  { %v2432_v11 = vpop.f32.mrb[32].mxu0 }
 0x51b   :  { %v3625_v48 = vadd.f32 %v2432_v11, %v2249_v49  ;;  %v1302_v63 = vpop.f32.mrb[33].mxu0 }
 0x51c   :  { %v3627_v46 = vadd.f32 %v2249_v49, %v1302_v63  ;;  %v2433_v61 = vpop.f32.mrb[34].mxu0 }
 0x51d   :  { %v3629_v5 = vadd.f32 %v2433_v61, %v2249_v49  ;;  %v1305_v52 = vpop.f32.mrb[35].mxu0  ;;  %v1371_v44 = vsel %vm451_vm1, %v3625_v48, 0.0 }
 0x51e   :  { %v3633_v50 = vadd.f32 %v2249_v49, %v1305_v52  ;;  %1372 = vadd.xlane.f32.xlu1 %v1371_v44  ;;  %v1365_v7 = vsel %vm451_vm1, %v3627_v46, 0.0 }
 0x51f   :  { %1366 = vadd.xlane.f32.xlu0 %v1365_v7  ;;  %v1374_v9 = vsel %vm451_vm1, %v3629_v5, 0.0 }
 0x520   :  { %v1368_v22 = vsel %vm451_vm1, %v3633_v50, 0.0 }
 0x522   :  { %1375 = vadd.xlane.f32.xlu1 %v1374_v9  ;;  %v2436_v14 = vpop.f32.mrb[36].mxu0 }
 0x523   :  { %v1318_v23 = vpop.f32.mrb[37].mxu0  ;;  %1369 = vadd.xlane.f32.xlu0 %v1368_v22  ;;  %v3643_v34 = vadd.f32 %v2436_v14, %v2249_v49 }
 0x524   :  { %v3641_v24 = vadd.f32 %v2249_v49, %v1318_v23  ;;  %v2437_v4 = vpop.f32.mrb[38].mxu0 }
 0x525   :  { %v1321_v42 = vpop.f32.mrb[39].mxu0  ;;  %v3649_v15 = vadd.f32 %v2437_v4, %v2249_v49  ;;  %v1383_v21 = vsel %vm451_vm1, %v3643_v34, 0.0 }
 0x526   :  { %v3645_v36 = vadd.f32 %v2249_v49, %v1321_v42  ;;  %v1377_v16 = vsel %vm451_vm1, %v3641_v24, 0.0 }
 0x527   :  { %1378 = vadd.xlane.f32.xlu0 %v1377_v16  ;;  %v1386_v10 = vsel %vm451_vm1, %v3649_v15, 0.0 }
 0x528   :  { %v1380_v12 = vsel %vm451_vm1, %v3645_v36, 0.0 }
 0x529   :  { %1381 = vadd.xlane.f32.xlu1 %v1380_v12 }
 0x52b   :  { %v2440_v25 = vpop.f32.mrb[40].mxu0  ;;  %1384 = vadd.xlane.f32.xlu0 %v1383_v21 }
 0x52c   :  { %v1334_v6 = vpop.f32.mrb[41].mxu0  ;;  %v3659_v19 = vadd.f32 %v2440_v25, %v2249_v49 }
 0x52d   :  { %v3657_v62 = vadd.f32 %v2249_v49, %v1334_v6  ;;  %v2441_v0 = vpop.f32.mrb[42].mxu0  ;;  %1387 = vadd.xlane.f32.xlu1 %v1386_v10 }
 0x52e   :  { %v1337_v17 = vpop.f32.mrb[43].mxu0  ;;  %v3665_v38 = vadd.f32 %v2441_v0, %v2249_v49  ;;  %v1395_v45 = vsel %vm451_vm1, %v3659_v19, 0.0 }
 0x52f   :  { %v3661_v20 = vadd.f32 %v2249_v49, %v1337_v17  ;;  %v1389_v37 = vsel %vm451_vm1, %v3657_v62, 0.0 }
 0x530   :  { %1390 = vadd.xlane.f32.xlu0 %v1389_v37  ;;  %v1398_v28 = vsel %vm451_vm1, %v3665_v38, 0.0 }
 0x531   :  { %v1392_v39 = vsel %vm451_vm1, %v3661_v20, 0.0 }
 0x532   :  { %1393 = vadd.xlane.f32.xlu1 %v1392_v39 }
 0x533   :  { %v2444_v40 = vpop.f32.mrb[44].mxu0 }
 0x534   :  { %v1350_v47 = vpop.f32.mrb[45].mxu0  ;;  %1396 = vadd.xlane.f32.xlu0 %v1395_v45  ;;  %v3675_v29 = vadd.f32 %v2444_v40, %v2249_v49 }
 0x535   :  { %v3671_v54 = vadd.f32 %v2249_v49, %v1350_v47  ;;  %v2445_v27 = vpop.f32.mrb[46].mxu0 }
 0x536   :  { %v1353_v32 = vpop.f32.mrb[47].mxu0  ;;  %1399 = vadd.xlane.f32.xlu1 %v1398_v28  ;;  %v3681_v31 = vadd.f32 %v2445_v27, %v2249_v49  ;;  %v1407_v53 = vsel %vm451_vm1, %v3675_v29, 0.0 }
 0x537   :  { %v3677_v35 = vadd.f32 %v2249_v49, %v1353_v32  ;;  %v1401_v2 = vsel %vm451_vm1, %v3671_v54, 0.0 }
 0x538   :  { %1402 = vadd.xlane.f32.xlu0 %v1401_v2  ;;  %v1410_v8 = vsel %vm451_vm1, %v3681_v31, 0.0 }
 0x539   :  { %v1404_v18 = vsel %vm451_vm1, %v3677_v35, 0.0 }
 0x53a   :  { %1405 = vadd.xlane.f32.xlu1 %v1404_v18 }
 0x53c   :  { %1408 = vadd.xlane.f32.xlu0 %v1407_v53 }
 0x53e   :  { %1411 = vadd.xlane.f32.xlu1 %v1410_v8 }
 0x5ab   :  { %v1373_v13 = vpop.xlane.xlu1 %1372 }
 0x5ac   :  { %v1416_v33 = vmul.f32 0.03125, %v1373_v13  ;;  %v1367_v56 = vpop.xlane.xlu0 %1366 }
 0x5ad   :  { %v1414_v57 = vmul.f32 0.03125, %v1367_v56 }
 0x5ae   :  { %v3690_v58 = vsub.f32 %v3625_v48, %v1416_v33 }
 0x5af   :  { %v3693_v59 = vsub.f32 %v3627_v46, %v1414_v57  ;;  %v1376_v60 = vpop.xlane.xlu1 %1375 }
 0x5b0   :  { %v1417_v1 = vmul.f32 0.03125, %v1376_v60  ;;  %v1370_v3 = vpop.xlane.xlu0 %1369  ;;  %v1448_v26 = vmul.f32 %v3690_v58, %v3690_v58 }
 0x5b1   :  { %v1415_v43 = vmul.f32 0.03125, %v1370_v3  ;;  %v1446_v41 = vmul.f32 %v3693_v59, %v3693_v59 }
 0x5b2   :  { %v3698_v30 = vsub.f32 %v3629_v5, %v1417_v1  ;;  %v1468_v52 = vsel %vm451_vm1, %v1448_v26, 0.0 }
 0x5b3   :  { %v3701_v51 = vsub.f32 %v3633_v50, %v1415_v43  ;;  %v1462_v55 = vsel %vm451_vm1, %v1446_v41, 0.0 }
 0x5b4   :  { %1463 = vadd.xlane.f32.xlu0 %v1462_v55  ;;  %v1379_v49 = vpop.xlane.xlu0 %1378  ;;  %v1449_v46 = vmul.f32 %v3698_v30, %v3698_v30 }
 0x5b5   :  { %v1418_v11 = vmul.f32 0.03125, %v1379_v49  ;;  %v1447_v48 = vmul.f32 %v3701_v51, %v3701_v51 }
 0x5b6   :  { %v1382_v63 = vpop.xlane.xlu1 %1381  ;;  %v1471_v23 = vsel %vm451_vm1, %v1449_v46, 0.0 }
 0x5b7   :  { %v3711_v61 = vsub.f32 %v3641_v24, %v1418_v11  ;;  %v1419_v5 = vmul.f32 0.03125, %v1382_v63  ;;  %v1465_v44 = vsel %vm451_vm1, %v1447_v48, 0.0 }
 0x5b8   :  { %1469 = vadd.xlane.f32.xlu0 %v1468_v52  ;;  %1466 = vadd.xlane.f32.xlu1 %v1465_v44  ;;  %v1385_v50 = vpop.xlane.xlu0 %1384  ;;  %v2494_v52 = vld [vmem:[%s4177_s12 + $0x8] sm:$0xff]  }
 0x5b9   :  { %v3716_v7 = vsub.f32 %v3645_v36, %v1419_v5  ;;  %v1420_v9 = vmul.f32 0.03125, %v1385_v50  ;;  %v1450_v14 = vmul.f32 %v3711_v61, %v3711_v61 }
 0x5ba   :  { %v1388_v22 = vpop.xlane.xlu1 %1387 }
 0x5bb   :  { %v3722_v24 = vsub.f32 %v3643_v34, %v1420_v9  ;;  %v1421_v4 = vmul.f32 0.03125, %v1388_v22  ;;  %v1474_v42 = vsel %vm451_vm1, %v1450_v14, 0.0  ;;  %v1451_v16 = vmul.f32 %v3716_v7, %v3716_v7 }
 0x5bc   :  { %1472 = vadd.xlane.f32.xlu1 %v1471_v23  ;;  %1475 = vadd.xlane.f32.xlu0 %v1474_v42 }
 0x5bd   :  { %v3728_v36 = vsub.f32 %v3649_v15, %v1421_v4  ;;  %v1391_v12 = vpop.xlane.xlu0 %1390  ;;  %v1452_v21 = vmul.f32 %v3722_v24, %v3722_v24  ;;  %v1477_v34 = vsel %vm451_vm1, %v1451_v16, 0.0 }
 0x5be   :  { %v1422_v25 = vmul.f32 0.03125, %v1391_v12 }
 0x5bf   :  { %v1394_v6 = vpop.xlane.xlu1 %1393  ;;  %v1480_v10 = vsel %vm451_vm1, %v1452_v21, 0.0  ;;  %v1453_v0 = vmul.f32 %v3728_v36, %v3728_v36 }
 0x5c0   :  { %v3737_v17 = vsub.f32 %v3657_v62, %v1422_v25  ;;  %v1423_v37 = vmul.f32 0.03125, %v1394_v6  ;;  %1478 = vadd.xlane.f32.xlu1 %v1477_v34  ;;  %1481 = vadd.xlane.f32.xlu0 %v1480_v10 }
 0x5c1   :  { %v1397_v15 = vpop.xlane.xlu0 %1396  ;;  %v1483_v27 = vsel %vm451_vm1, %v1453_v0, 0.0 }
 0x5c2   :  { %v3740_v39 = vsub.f32 %v3661_v20, %v1423_v37  ;;  %v1424_v40 = vmul.f32 0.03125, %v1397_v15  ;;  %v1454_v45 = vmul.f32 %v3737_v17, %v3737_v17 }
 0x5c3   :  { %v1400_v47 = vpop.xlane.xlu1 %1399 }
 0x5c4   :  { %v3746_v28 = vsub.f32 %v3659_v19, %v1424_v40  ;;  %v1425_v32 = vmul.f32 0.03125, %v1400_v47  ;;  %1484 = vadd.xlane.f32.xlu1 %v1483_v27  ;;  %v1486_v62 = vsel %vm451_vm1, %v1454_v45, 0.0  ;;  %v1455_v2 = vmul.f32 %v3740_v39, %v3740_v39  ;;  %v3794_v47 = vld [vmem:[%s4179_s14] ss:$0 sm:$0xff] }
 0x5c5   :  { %1487 = vadd.xlane.f32.xlu0 %v1486_v62  ;;  %v1403_v20 = vpop.xlane.xlu0 %1402 }
 0x5c6   :  { %v3752_v18 = vsub.f32 %v3665_v38, %v1425_v32  ;;  %v1426_v53 = vmul.f32 0.03125, %v1403_v20  ;;  %v1456_v8 = vmul.f32 %v3746_v28, %v3746_v28  ;;  %v1489_v19 = vsel %vm451_vm1, %v1455_v2, 0.0  ;;  %v3800_v20 = vld [vmem:[%s4180_s15] ss:$0 sm:$0xff] }
 0x5c7   :  { %v1406_v13 = vpop.xlane.xlu1 %1405 }
 0x5c8   :  { %v3758_v33 = vsub.f32 %v3671_v54, %v1426_v53  ;;  %v1427_v56 = vmul.f32 0.03125, %v1406_v13  ;;  %1490 = vadd.xlane.f32.xlu1 %v1489_v19  ;;  %v1492_v57 = vsel %vm451_vm1, %v1456_v8, 0.0  ;;  %v1457_v60 = vmul.f32 %v3752_v18, %v3752_v18 }
 0x5c9   :  { %1493 = vadd.xlane.f32.xlu0 %v1492_v57  ;;  %v1409_v38 = vpop.xlane.xlu0 %1408 }
 0x5ca   :  { %v3764_v1 = vsub.f32 %v3677_v35, %v1427_v56  ;;  %v1428_v3 = vmul.f32 0.03125, %v1409_v38  ;;  %v1458_v43 = vmul.f32 %v3758_v33, %v3758_v33  ;;  %v1495_v54 = vsel %vm451_vm1, %v1457_v60, 0.0 }
 0x5cb   :  { %v1412_v41 = vpop.xlane.xlu1 %1411 }
 0x5cc   :  { %v3770_v55 = vsub.f32 %v3675_v29, %v1428_v3  ;;  %v1429_v26 = vmul.f32 0.03125, %v1412_v41  ;;  %1496 = vadd.xlane.f32.xlu1 %v1495_v54  ;;  %v1498_v49 = vsel %vm451_vm1, %v1458_v43, 0.0  ;;  %v1459_v11 = vmul.f32 %v3764_v1, %v3764_v1 }
 0x5cd   :  { %1499 = vadd.xlane.f32.xlu0 %v1498_v49 }
 0x5ce   :  { %v3776_v35 = vsub.f32 %v3681_v31, %v1429_v26  ;;  %v1460_v48 = vmul.f32 %v3770_v55, %v3770_v55  ;;  %v1501_v63 = vsel %vm451_vm1, %v1459_v11, 0.0  ;;  %v2493_v31 = vld [vmem:[%s4177_s12] sm:$0xff]  }
 0x5cf   :  { %2446 = vmatprep.subr.bf16.mxu1 %v2493_v31 }
 0x5d0   :  { %1502 = vadd.xlane.f32.xlu1 %v1501_v63  ;;  %v1504_v29 = vsel %vm451_vm1, %v1460_v48, 0.0  ;;  %v1461_v46 = vmul.f32 %v3776_v35, %v3776_v35  ;;  %2447 = vmatpush3.bf16.msra.mxu1 %v2493_v31 }
 0x5d1   :  { %1505 = vadd.xlane.f32.xlu0 %v1504_v29  ;;  %2448 = vmatprep.subr.bf16.mxu1 %v2494_v52 }
 0x5d2   :  { %v1507_v5 = vsel %vm451_vm1, %v1461_v46, 0.0 }
 0x5d4   :  { %1508 = vadd.xlane.f32.xlu1 %v1507_v5  ;;  %2449 = vmatpush3.bf16.msra.mxu1 %v2494_v52 }
 0x641   :  { %v1464_v44 = vpop.xlane.xlu0 %1463 }
 0x642   :  { %v1510_v50 = vmul.f32 0.03125, %v1464_v44 }
 0x644   :  { %v1526_v9 = vadd.f32 1e-05, %v1510_v50 }
 0x645   :  { %v1467_v14 = vpop.xlane.xlu1 %1466  ;;  %v1470_v22 = vpop.xlane.xlu0 %1469 }
 0x646   :  { %2751 = vrsqrt.f32 %v1526_v9  ;;  %v1511_v23 = vmul.f32 0.03125, %v1467_v14  ;;  %v1512_v4 = vmul.f32 0.03125, %v1470_v22 }
 0x648   :  { %v1527_v42 = vadd.f32 1e-05, %v1511_v23  ;;  %v1528_v16 = vadd.f32 1e-05, %v1512_v4 }
 0x649   :  { %v1473_v12 = vpop.xlane.xlu1 %1472  ;;  %v1476_v21 = vpop.xlane.xlu0 %1475 }
 0x64a   :  { %2753 = vrsqrt.f32 %v1527_v42  ;;  %v1513_v25 = vmul.f32 0.03125, %v1473_v12  ;;  %v1514_v6 = vmul.f32 0.03125, %v1476_v21 }
 0x64b   :  { %2755 = vrsqrt.f32 %v1528_v16 }
 0x64c   :  { %v1529_v34 = vadd.f32 1e-05, %v1513_v25  ;;  %v1530_v10 = vadd.f32 1e-05, %v1514_v6 }
 0x64d   :  { %v1479_v0 = vpop.xlane.xlu1 %1478  ;;  %v1482_v37 = vpop.xlane.xlu0 %1481 }
 0x64e   :  { %2757 = vrsqrt.f32 %v1529_v34  ;;  %v1515_v15 = vmul.f32 0.03125, %v1479_v0  ;;  %v1516_v40 = vmul.f32 0.03125, %v1482_v37 }
 0x64f   :  { %2759 = vrsqrt.f32 %v1530_v10 }
 0x650   :  { %v2752_v45 = vpop.eup %2751  ;;  %v1531_v27 = vadd.f32 1e-05, %v1515_v15  ;;  %v1532_v32 = vadd.f32 1e-05, %v1516_v40 }
 0x651   :  { %v1558_v62 = vmul.f32 %v2752_v45, %v3693_v59  ;;  %v1485_v2 = vpop.xlane.xlu1 %1484 }
 0x652   :  { %2761 = vrsqrt.f32 %v1531_v27  ;;  %v1517_v53 = vmul.f32 0.03125, %v1485_v2  ;;  %v1488_v8 = vpop.xlane.xlu0 %1487 }
 0x653   :  { %2763 = vrsqrt.f32 %v1532_v32  ;;  %v1518_v13 = vmul.f32 0.03125, %v1488_v8  ;;  %v1581_v19 = vmul.f32 %v3794_v47, %v1558_v62 }
 0x654   :  { %v2754_v56 = vpop.eup %2753  ;;  %v1533_v57 = vadd.f32 1e-05, %v1517_v53 }
 0x655   :  { %v2756_v60 = vpop.eup %2755  ;;  %v1559_v38 = vmul.f32 %v2754_v56, %v3701_v51  ;;  %v1534_v3 = vadd.f32 1e-05, %v1518_v13  ;;  %v1491_v59 = vpop.xlane.xlu1 %1490  ;;  %v3805_v43 = vadd.f32 %v3800_v20, %v1581_v19 }
 0x656   :  { %v1560_v41 = vmul.f32 %v2756_v60, %v3690_v58  ;;  %2765 = vrsqrt.f32 %v1533_v57  ;;  %v1519_v54 = vmul.f32 0.03125, %v1491_v59  ;;  %v1494_v26 = vpop.xlane.xlu0 %1493 }
 0x657   :  { %2767 = vrsqrt.f32 %v1534_v3  ;;  %v1520_v49 = vmul.f32 0.03125, %v1494_v26  ;;  %v1582_v11 = vmul.f32 %v3794_v47, %v1559_v38  ;;  %v2262_v48 = vmul.f32 -1.442695, %v3805_v43 }
 0x658   :  { %v2758_v63 = vpop.eup %2757  ;;  %v1583_v29 = vmul.f32 %v3794_v47, %v1560_v41  ;;  %v1535_v51 = vadd.f32 1e-05, %v1519_v54 }
 0x659   :  { %v2760_v46 = vpop.eup %2759  ;;  %v1561_v5 = vmul.f32 %v2758_v63, %v3698_v30  ;;  %v1536_v31 = vadd.f32 1e-05, %v1520_v49  ;;  %v1497_v52 = vpop.xlane.xlu1 %1496  ;;  %v3813_v58 = vadd.f32 %v3800_v20, %v1582_v11  ;;  %2769 = vpow2.f32 %v2262_v48 }
 0x65a   :  { %v3816_v44 = vadd.f32 %v3800_v20, %v1583_v29  ;;  %v1562_v50 = vmul.f32 %v2760_v46, %v3711_v61  ;;  %2771 = vrsqrt.f32 %v1535_v51  ;;  %v1521_v9 = vmul.f32 0.03125, %v1497_v52  ;;  %v1500_v14 = vpop.xlane.xlu0 %1499 }
 0x65b   :  { %v1584_v22 = vmul.f32 %v3794_v47, %v1561_v5  ;;  %2773 = vrsqrt.f32 %v1536_v31  ;;  %v1522_v23 = vmul.f32 0.03125, %v1500_v14  ;;  %v2263_v30 = vmul.f32 -1.442695, %v3813_v58 }
 0x65c   :  { %v2762_v4 = vpop.eup %2761  ;;  %v2264_v42 = vmul.f32 -1.442695, %v3816_v44  ;;  %v1537_v16 = vadd.f32 1e-05, %v1521_v9  ;;  %v1585_v12 = vmul.f32 %v3794_v47, %v1562_v50 }
 0x65d   :  { %v2764_v21 = vpop.eup %2763  ;;  %v3824_v25 = vadd.f32 %v3800_v20, %v1584_v22  ;;  %v1563_v61 = vmul.f32 %v2762_v4, %v3716_v7  ;;  %v1538_v6 = vadd.f32 1e-05, %v1522_v23  ;;  %v1503_v34 = vpop.xlane.xlu1 %1502  ;;  %2775 = vpow2.f32 %v2263_v30 }
 0x65e   :  { %2777 = vpow2.f32 %v2264_v42  ;;  %v1564_v10 = vmul.f32 %v2764_v21, %v3722_v24  ;;  %v1523_v0 = vmul.f32 0.03125, %v1503_v34  ;;  %v1506_v37 = vpop.xlane.xlu0 %1505  ;;  %v3829_v15 = vadd.f32 %v3800_v20, %v1585_v12 }
 0x65f   :  { %v2265_v40 = vmul.f32 -1.442695, %v3824_v25  ;;  %2779 = vrsqrt.f32 %v1537_v16  ;;  %v1524_v45 = vmul.f32 0.03125, %v1506_v37  ;;  %v1586_v27 = vmul.f32 %v3794_v47, %v1563_v61 }
 0x660   :  { %v2766_v32 = vpop.eup %2765  ;;  %2781 = vrsqrt.f32 %v1538_v6  ;;  %v1539_v7 = vadd.f32 1e-05, %v1523_v0  ;;  %v2266_v62 = vmul.f32 -1.442695, %v3829_v15  ;;  %v1587_v2 = vmul.f32 %v3794_v47, %v1564_v10 }
 0x661   :  { %v2768_v53 = vpop.eup %2767  ;;  %2783 = vpow2.f32 %v2265_v40  ;;  %v1565_v24 = vmul.f32 %v2766_v32, %v3728_v36  ;;  %v1540_v8 = vadd.f32 1e-05, %v1524_v45  ;;  %v1509_v13 = vpop.xlane.xlu1 %1508  ;;  %v3837_v19 = vadd.f32 %v3800_v20, %v1586_v27 }
 0x662   :  { %v1566_v56 = vmul.f32 %v2768_v53, %v3737_v17  ;;  %2785 = vrsqrt.f32 %v1539_v7  ;;  %v1525_v57 = vmul.f32 0.03125, %v1509_v13  ;;  %v3841_v60 = vadd.f32 %v3800_v20, %v1587_v2 }
 0x663   :  { %v2770_v38 = vpop.eup %2769  ;;  %2787 = vrsqrt.f32 %v1540_v8  ;;  %v2267_v3 = vmul.f32 -1.442695, %v3837_v19  ;;  %v1588_v59 = vmul.f32 %v3794_v47, %v1565_v24 }
 0x664   :  { %v2772_v41 = vpop.eup %2771  ;;  %v1541_v36 = vadd.f32 1e-05, %v1525_v57  ;;  %v1668_v54 = vadd.f32 1.0, %v2770_v38  ;;  %2789 = vpow2.f32 %v2266_v62  ;;  %v2268_v26 = vmul.f32 -1.442695, %v3841_v60 }
 0x665   :  { %v2774_v49 = vpop.eup %2773  ;;  %v1567_v17 = vmul.f32 %v2772_v41, %v3740_v39  ;;  %2791 = vpow2.f32 %v2267_v3  ;;  %v3848_v11 = vadd.f32 %v3800_v20, %v1588_v59  ;;  %v1589_v48 = vmul.f32 %v3794_v47, %v1566_v56 }
 0x666   :  { %v1568_v63 = vmul.f32 %v2774_v49, %v3746_v28  ;;  %2793 = vrsqrt.f32 %v1541_v36 }
 0x667   :  { %v2776_v29 = vpop.eup %2775  ;;  %2795 = vrcp.f32 %v1668_v54  ;;  %v2269_v51 = vmul.f32 -1.442695, %v3848_v11  ;;  %v1590_v46 = vmul.f32 %v3794_v47, %v1567_v17  ;;  %v3855_v5 = vadd.f32 %v3800_v20, %v1589_v48 }
 0x668   :  { %v2778_v31 = vpop.eup %2777  ;;  %v1669_v39 = vadd.f32 1.0, %v2776_v29  ;;  %2797 = vpow2.f32 %v2268_v26  ;;  %v1591_v52 = vmul.f32 %v3794_v47, %v1568_v63 }
 0x669   :  { %v2780_v50 = vpop.eup %2779  ;;  %v1670_v9 = vadd.f32 1.0, %v2778_v31  ;;  %2799 = vpow2.f32 %v2269_v51  ;;  %v3859_v28 = vadd.f32 %v3800_v20, %v1590_v46  ;;  %v2270_v14 = vmul.f32 -1.442695, %v3855_v5 }
 0x66a   :  { %v2782_v22 = vpop.eup %2781  ;;  %v1569_v23 = vmul.f32 %v2780_v50, %v3752_v18  ;;  %2801 = vrcp.f32 %v1669_v39  ;;  %v3864_v30 = vadd.f32 %v3800_v20, %v1591_v52 }
 0x66b   :  { %v2784_v4 = vpop.eup %2783  ;;  %2803 = vrcp.f32 %v1670_v9  ;;  %v1570_v42 = vmul.f32 %v2782_v22, %v3758_v33  ;;  %v2271_v16 = vmul.f32 -1.442695, %v3859_v28 }
 0x66c   :  { %v2786_v12 = vpop.eup %2785  ;;  %v1671_v21 = vadd.f32 1.0, %v2784_v4  ;;  %2805 = vpow2.f32 %v2270_v14  ;;  %v1592_v61 = vmul.f32 %v3794_v47, %v1569_v23  ;;  %v2272_v6 = vmul.f32 -1.442695, %v3864_v30 }
 0x66d   :  { %v2788_v34 = vpop.eup %2787  ;;  %v1571_v18 = vmul.f32 %v2786_v12, %v3764_v1  ;;  %2807 = vpow2.f32 %v2271_v16  ;;  %v1593_v10 = vmul.f32 %v3794_v47, %v1570_v42 }
 0x66e   :  { %v2790_v0 = vpop.eup %2789  ;;  %2809 = vrcp.f32 %v1671_v21  ;;  %v1572_v37 = vmul.f32 %v2788_v34, %v3770_v55  ;;  %v3874_v33 = vadd.f32 %v3800_v20, %v1592_v61 }
 0x66f   :  { %v2792_v40 = vpop.eup %2791  ;;  %v1672_v45 = vadd.f32 1.0, %v2790_v0  ;;  %2811 = vpow2.f32 %v2272_v6  ;;  %v1594_v27 = vmul.f32 %v3794_v47, %v1571_v18  ;;  %v3878_v32 = vadd.f32 %v3800_v20, %v1593_v10 }
 0x670   :  { %v2794_v7 = vpop.eup %2793  ;;  %v1673_v1 = vadd.f32 1.0, %v2792_v40  ;;  %v2273_v62 = vmul.f32 -1.442695, %v3874_v33  ;;  %v1595_v2 = vmul.f32 %v3794_v47, %v1572_v37 }
 0x671   :  { %v2796_v53 = vpop.eup %2795  ;;  %v1573_v55 = vmul.f32 %v2794_v7, %v3776_v35  ;;  %2813 = vrcp.f32 %v1672_v45  ;;  %v3884_v24 = vadd.f32 %v3800_v20, %v1594_v27  ;;  %v2274_v8 = vmul.f32 -1.442695, %v3878_v32 }
 0x672   :  { %v2798_v13 = vpop.eup %2797  ;;  %2815 = vrcp.f32 %v1673_v1  ;;  %v3888_v56 = vadd.f32 %v3800_v20, %v1595_v2  ;;  %v1716_v26 = vmul.f32 %v2796_v53, %v3805_v43 }
 0x673   :  { %v2800_v57 = vpop.eup %2799  ;;  %v1674_v38 = vadd.f32 1.0, %v2798_v13  ;;  %2817 = vpow2.f32 %v2273_v62  ;;  %v2275_v3 = vmul.f32 -1.442695, %v3884_v24  ;;  %v1596_v59 = vmul.f32 %v3794_v47, %v1573_v55 }
 0x674   :  { %v2802_v41 = vpop.eup %2801  ;;  %v1675_v35 = vadd.f32 1.0, %v2800_v57  ;;  %2819 = vpow2.f32 %v2274_v8  ;;  %v2276_v36 = vmul.f32 -1.442695, %v3888_v56 }
 0x675   :  { %v2804_v54 = vpop.eup %2803  ;;  %v1717_v49 = vmul.f32 %v2802_v41, %v3813_v58  ;;  %2821 = vrcp.f32 %v1674_v38  ;;  %v3896_v17 = vadd.f32 %v3800_v20, %v1596_v59  ;;  %v1936_v59 = vlaneseq }
 0x676   :  { %v2806_v48 = vpop.eup %2805  ;;  %2823 = vrcp.f32 %v1675_v35  ;;  %v1718_v43 = vmul.f32 %v2804_v54, %v3816_v44 }
 0x677   :  { %v2808_v63 = vpop.eup %2807  ;;  %v1732_v29 = vpack.c.bf16 %v1717_v49, %v1716_v26  ;;  %v1676_v51 = vadd.f32 1.0, %v2806_v48  ;;  %2825 = vpow2.f32 %v2275_v3  ;;  %v2277_v47 = vmul.f32 -1.442695, %v3896_v17 }
 0x678   :  { %v2810_v46 = vpop.eup %2809  ;;  %v1677_v31 = vadd.f32 1.0, %v2808_v63  ;;  %2827 = vpow2.f32 %v2276_v36  ;;  %v3924_v41 = vand.u32 127, %v1936_v59 }
 0x679   :  { %v2812_v39 = vpop.eup %2811  ;;  %v1719_v58 = vmul.f32 %v2810_v46, %v3824_v25  ;;  %2450 = vmatprep.mubr.msk.bf16.mxu1 %vm451_vm1, %v1732_v29  ;;  %2829 = vrcp.f32 %v1676_v51 }
 0x67a   :  { %2831 = vrcp.f32 %v1677_v31  ;;  %v1678_v20 = vadd.f32 1.0, %v2812_v39  ;;  %vm1938_vm3 = vcmp.lt.s32.totalorder %v3924_v41, 8 }
 0x67b   :  { %v2814_v52 = vpop.eup %2813  ;;  %v1733_v50 = vpack.c.bf16 %v1719_v58, %v1718_v43  ;;  %2833 = vpow2.f32 %v2277_v47 }
 0x67c   :  { %v2816_v9 = vpop.eup %2815  ;;  %v1720_v22 = vmul.f32 %v2814_v52, %v3829_v15  ;;  %2835 = vrcp.f32 %v1678_v20 }
 0x67d   :  { %v2818_v14 = vpop.eup %2817  ;;  %2451 = vmatmul.mubr.msk.bf16.vlgmr.msra.gmra.mrb[32].mxu1 %vm451_vm1, %v1733_v50  ;;  %v1721_v23 = vmul.f32 %v2816_v9, %v3837_v19 }
 0x67e   :  { %v2820_v4 = vpop.eup %2819  ;;  %v1679_v44 = vadd.f32 1.0, %v2818_v14 }
 0x67f   :  { %v2822_v25 = vpop.eup %2821  ;;  %v1734_v42 = vpack.c.bf16 %v1721_v23, %v1720_v22  ;;  %v1680_v16 = vadd.f32 1.0, %v2820_v4 }
 0x680   :  { %v2824_v12 = vpop.eup %2823  ;;  %2837 = vrcp.f32 %v1679_v44  ;;  %v1722_v61 = vmul.f32 %v2822_v25, %v3841_v60 }
 0x681   :  { %v2826_v21 = vpop.eup %2825  ;;  %2454 = vmatprep.mubr.msk.bf16.mxu1 %vm451_vm1, %v1734_v42  ;;  %v1723_v6 = vmul.f32 %v2824_v12, %v3848_v11  ;;  %2839 = vrcp.f32 %v1680_v16 }
 0x682   :  { %v2828_v34 = vpop.eup %2827  ;;  %v1681_v18 = vadd.f32 1.0, %v2826_v21 }
 0x683   :  { %v2830_v15 = vpop.eup %2829  ;;  %v1735_v19 = vpack.c.bf16 %v1723_v6, %v1722_v61  ;;  %v1682_v10 = vadd.f32 1.0, %v2828_v34 }
 0x684   :  { %v2832_v0 = vpop.eup %2831  ;;  %2841 = vrcp.f32 %v1681_v18  ;;  %v1724_v40 = vmul.f32 %v2830_v15, %v3855_v5 }
 0x685   :  { %v2834_v37 = vpop.eup %2833  ;;  %2455 = vmatmul.mubr.msk.bf16.gmra.mrb[36].mxu1 %vm451_vm1, %v1735_v19  ;;  %v1725_v45 = vmul.f32 %v2832_v0, %v3859_v28  ;;  %2843 = vrcp.f32 %v1682_v10  ;;  %v1886_v19 = vld [vmem:[%s4166_s1 + $0x10] sm:$0xff] }
 0x686   :  { %v1683_v27 = vadd.f32 1.0, %v2834_v37  ;;  %v2836_v7 = vpop.eup %2835 }
 0x687   :  { %v1736_v60 = vpack.c.bf16 %v1725_v45, %v1724_v40  ;;  %v1726_v1 = vmul.f32 %v2836_v7, %v3864_v30 }
 0x688   :  { %2845 = vrcp.f32 %v1683_v27  ;;  %v1898_v27 = vunpack.c.2.s8 %v1886_v19 }
 0x689   :  { %2458 = vmatprep.mubr.msk.bf16.mxu1 %vm451_vm1, %v1736_v60 }
 0x68a   :  { %v2838_v11 = vpop.eup %2837  ;;  %vm1914_vm11 = vcmp.ne.s32.totalorder %v1898_v27, 0 }
 0x68b   :  { %v1727_v62 = vmul.f32 %v2838_v11, %v3874_v33  ;;  %v2840_v2 = vpop.eup %2839  ;;  %v1884_v33 = vld [vmem:[%s4166_s1] sm:$0xff]  ;;  %v1899_v11 = vunpack.c.3.s8 %v1886_v19 }
 0x68c   :  { %v1728_v5 = vmul.f32 %v2840_v2, %v3878_v32  ;;  %v1890_v32 = vunpack.c.2.s8 %v1884_v33  ;;  %v1891_v35 = vunpack.c.3.s8 %v1884_v33  ;;  %v1889_v54 = vunpack.c.1.s8 %v1884_v33 }
 0x68d   :  { %v1737_v53 = vpack.c.bf16 %v1727_v62, %v1726_v1  ;;  %v1896_v1 = vunpack.c.0.s8 %v1886_v19  ;;  %vm1915_vm12 = vcmp.ne.s32.totalorder %v1899_v11, 0 }
 0x68e   :  { %v2842_v55 = vpop.eup %2841  ;;  %vm1906_vm2 = vcmp.ne.s32.totalorder %v1890_v32, 0  ;;  %vm1907_vm4 = vcmp.ne.s32.totalorder %v1891_v35, 0  ;;  %vm3947_vm6 = vcmp.ne.s32.totalorder %v1889_v54, 0 }
 0x68f   :  { %2459 = vmatmul.mubr.msk.bf16.gmra.mrb[40].mxu1 %vm451_vm1, %v1737_v53  ;;  %v1729_v28 = vmul.f32 %v2842_v55, %v3884_v24  ;;  %v2844_v8 = vpop.eup %2843  ;;  %v3929_v24 = vld [vmem:[%s4178_s13] ss:$0 sm:$0xff]  ;;  %v1897_v53 = vunpack.c.1.s8 %v1886_v19  ;;  %vm4012_vm13 = vcmp.ne.s32.totalorder %v1896_v1, 0 }
 0x690   :  { %v1730_v38 = vmul.f32 %v2844_v8, %v3888_v56  ;;  %v1888_v56 = vunpack.c.0.s8 %v1884_v33 }
 0x691   :  { %v1738_v13 = vpack.c.bf16 %v1729_v28, %v1728_v5  ;;  %vm4025_vm14 = vcmp.ne.s32.totalorder %v1897_v53, 0 }
 0x692   :  { %v2846_v57 = vpop.eup %2845  ;;  %vm3937_vm5 = vcmp.ne.s32.totalorder %v1888_v56, 0 }
 0x693   :  { %2462 = vmatprep.mubr.msk.bf16.mxu1 %vm451_vm1, %v1738_v13  ;;  %v1731_v30 = vmul.f32 %v2846_v57, %v3896_v17  ;;  %v1885_v17 = vld [vmem:[%s4166_s1 + $0x8] sm:$0xff]  ;;  %v1887_v57 = vld [vmem:[%s4166_s1 + $0x18] sm:$0xff]  ;;  %s3058_s1 = smov [#allocation11]  }
 0x694   :  { %v1894_v58 = vunpack.c.2.s8 %v1885_v17  ;;  %v1895_v9 = vunpack.c.3.s8 %v1885_v17  ;;  %v1892_v14 = vunpack.c.0.s8 %v1885_v17  ;;  %v1893_v25 = vunpack.c.1.s8 %v1885_v17  ;;  %s2120_s4 = sshll.u32 %s3058_s1, 4  ;;  %s2121_s4 = int_to_ptr.vmem [resolvable:$true] %s2120_s4 }
 0x695   :  { %v1739_v3 = vpack.c.bf16 %v1731_v30, %v1730_v38  ;;  %v1902_v17 = vunpack.c.2.s8 %v1887_v57  ;;  %s3021_s27 = scalar_lea.vmem %s2121_s4, 2048  ;;  %p3026_p13 = scmp.lt.s32.totalorder %s2121_s4, %s2121_s4 }
 0x696   :  { %vm3965_vm7 = vcmp.ne.s32.totalorder %v1894_v58, 0  ;;  %vm1911_vm8 = vcmp.ne.s32.totalorder %v1895_v9, 0  ;;  %vm3976_vm9 = vcmp.ne.s32.totalorder %v1892_v14, 0  ;;  %vm1909_vm10 = vcmp.ne.s32.totalorder %v1893_v25, 0  ;;  %p3022_p12 = scmp.ne.s32.totalorder %s2121_s4, %s3021_s27  ;;  %p3027_p0 = scmp.lt.s32.totalorder %s3021_s27, %s3021_s27 }
 0x697   :  { %2463 = vmatmul.mubr.msk.bf16.gmra.mrb[44].mxu1 %vm451_vm1, %v1739_v3  ;;  %vm1918_vm1 = vcmp.ne.s32.totalorder %v1902_v17, 0 }
 0x698   :  { %p3028_p1 = por %p3027_p0, %p3026_p13 }
 0x69a   :  { %p3029_p2 = pnand %p3028_p1, %p3022_p12 }
 0x750   :  { %v2452_v36 = vpop.f32.mrb[32].mxu1 }
 0x751   :  { %v1830_v26 = vadd.f32 %v2452_v36, %v3929_v24  ;;  %v1821_v49 = vpop.f32.mrb[33].mxu1  ;;  %v1900_v36 = vunpack.c.0.s8 %v1887_v57 }
 0x752   :  { %v1822_v48 = vadd.f32 %v3929_v24, %v1821_v49  ;;  %v2453_v63 = vpop.f32.mrb[34].mxu1  ;;  %v1901_v49 = vunpack.c.1.s8 %v1887_v57 }
 0x753   :  { %v1833_v51 = vadd.f32 %v2453_v63, %v3929_v24  ;;  %v1824_v47 = vpop.f32.mrb[35].mxu1  ;;  %v1922_v46 = vsel %vm1906_vm2, %v1830_v26, -1e+08  ;;  %vm1916_vm15 = vcmp.ne.s32.totalorder %v1900_v36, 0 }
 0x754   :  { %v1825_v31 = vadd.f32 %v3929_v24, %v1824_v47  ;;  %v3945_v39 = vsel %vm1938_vm3, %v1922_v46, -2e+08  ;;  %v1920_v52 = vsel %vm3937_vm5, %v1822_v48, -1e+08  ;;  %vm1917_vm0 = vcmp.ne.s32.totalorder %v1901_v49, 0 }
 0x755   :  { %1959 = vmax.xlane.f32.xlu0 %v3945_v39  ;;  %v1923_v20 = vsel %vm1907_vm4, %v1833_v51, -1e+08  ;;  %v3963_v4 = vsel %vm1938_vm3, %v1920_v52, -2e+08  ;;  %v1903_v51 = vunpack.c.3.s8 %v1887_v57 }
 0x756   :  { %v3956_v50 = vsel %vm1938_vm3, %v1923_v20, -2e+08  ;;  %v1921_v22 = vsel %vm3947_vm6, %v1825_v31, -1e+08 }
 0x757   :  { %1961 = vmax.xlane.f32.xlu1 %v3956_v50  ;;  %v3974_v61 = vsel %vm1938_vm3, %v1921_v22, -2e+08  ;;  %vm1919_vm2 = vcmp.ne.s32.totalorder %v1903_v51, 0 }
 0x758   :  { %v2456_v23 = vpop.f32.mrb[36].mxu1 }
 0x759   :  { %v1846_v42 = vadd.f32 %v2456_v23, %v3929_v24  ;;  %1955 = vmax.xlane.f32.xlu0 %v3963_v4  ;;  %v1837_v16 = vpop.f32.mrb[37].mxu1 }
 0x75a   :  { %v1838_v12 = vadd.f32 %v3929_v24, %v1837_v16  ;;  %v2457_v21 = vpop.f32.mrb[38].mxu1 }
 0x75b   :  { %v1849_v34 = vadd.f32 %v2457_v21, %v3929_v24  ;;  %1957 = vmax.xlane.f32.xlu1 %v3974_v61  ;;  %v1840_v18 = vpop.f32.mrb[39].mxu1  ;;  %v1926_v15 = vsel %vm3965_vm7, %v1846_v42, -1e+08 }
 0x75c   :  { %v1841_v10 = vadd.f32 %v3929_v24, %v1840_v18  ;;  %v3990_v0 = vsel %vm1938_vm3, %v1926_v15, -2e+08  ;;  %v1924_v40 = vsel %vm3976_vm9, %v1838_v12, -1e+08 }
 0x75d   :  { %1967 = vmax.xlane.f32.xlu0 %v3990_v0  ;;  %v1927_v37 = vsel %vm1911_vm8, %v1849_v34, -1e+08  ;;  %v4002_v7 = vsel %vm1938_vm3, %v1924_v40, -2e+08 }
 0x75e   :  { %v3997_v45 = vsel %vm1938_vm3, %v1927_v37, -2e+08  ;;  %v1925_v60 = vsel %vm1909_vm10, %v1841_v10, -1e+08 }
 0x75f   :  { %1969 = vmax.xlane.f32.xlu1 %v3997_v45  ;;  %v4007_v2 = vsel %vm1938_vm3, %v1925_v60, -2e+08 }
 0x761   :  { %1963 = vmax.xlane.f32.xlu0 %v4002_v7 }
 0x762   :  { %v2460_v62 = vpop.f32.mrb[40].mxu1 }
 0x763   :  { %v1862_v55 = vadd.f32 %v2460_v62, %v3929_v24  ;;  %v1853_v5 = vpop.f32.mrb[41].mxu1  ;;  %1965 = vmax.xlane.f32.xlu1 %v4007_v2 }
 0x764   :  { %v1854_v28 = vadd.f32 %v3929_v24, %v1853_v5  ;;  %v2461_v8 = vpop.f32.mrb[42].mxu1 }
 0x765   :  { %v1865_v38 = vadd.f32 %v2461_v8, %v3929_v24  ;;  %v1856_v30 = vpop.f32.mrb[43].mxu1  ;;  %v1930_v3 = vsel %vm1914_vm11, %v1862_v55, -1e+08 }
 0x766   :  { %v1857_v33 = vadd.f32 %v3929_v24, %v1856_v30  ;;  %v4023_v59 = vsel %vm1938_vm3, %v1930_v3, -2e+08  ;;  %v1928_v56 = vsel %vm4012_vm13, %v1854_v28, -1e+08 }
 0x767   :  { %1975 = vmax.xlane.f32.xlu0 %v4023_v59  ;;  %v1931_v35 = vsel %vm1915_vm12, %v1865_v38, -1e+08  ;;  %v4041_v63 = vsel %vm1938_vm3, %v1928_v56, -2e+08 }
 0x768   :  { %v4034_v54 = vsel %vm1938_vm3, %v1931_v35, -2e+08  ;;  %v1929_v26 = vsel %vm4025_vm14, %v1857_v33, -1e+08 }
 0x769   :  { %1977 = vmax.xlane.f32.xlu1 %v4034_v54  ;;  %v4048_v43 = vsel %vm1938_vm3, %v1929_v26, -2e+08 }
 0x76a   :  { %v2464_v48 = vpop.f32.mrb[44].mxu1 }
 0x76b   :  { %1971 = vmax.xlane.f32.xlu0 %v4041_v63  ;;  %v1869_v29 = vpop.f32.mrb[45].mxu1  ;;  %v1878_v47 = vadd.f32 %v2464_v48, %v3929_v24 }
 0x76c   :  { %v1870_v46 = vadd.f32 %v3929_v24, %v1869_v29  ;;  %v2465_v31 = vpop.f32.mrb[46].mxu1 }
 0x76d   :  { %1973 = vmax.xlane.f32.xlu1 %v4048_v43  ;;  %v1872_v58 = vpop.f32.mrb[47].mxu1  ;;  %v1881_v20 = vadd.f32 %v2465_v31, %v3929_v24  ;;  %v1934_v23 = vsel %vm1918_vm1, %v1878_v47, -1e+08 }
 0x76e   :  { %v1873_v52 = vadd.f32 %v3929_v24, %v1872_v58  ;;  %v1932_v9 = vsel %vm1916_vm15, %v1870_v46, -1e+08  ;;  %v4065_v24 = vsel %vm1938_vm3, %v1934_v23, -2e+08 }
 0x76f   :  { %v4055_v14 = vsel %vm1938_vm3, %v1932_v9, -2e+08  ;;  %v1935_v25 = vsel %vm1919_vm2, %v1881_v20, -1e+08 }
 0x770   :  { %1979 = vmax.xlane.f32.xlu0 %v4055_v14  ;;  %v1933_v22 = vsel %vm1917_vm0, %v1873_v52, -1e+08  ;;  %v4070_v42 = vsel %vm1938_vm3, %v1935_v25, -2e+08 }
 0x771   :  { %v4060_v44 = vsel %vm1938_vm3, %v1933_v22, -2e+08 }
 0x772   :  { %1981 = vmax.xlane.f32.xlu1 %v4060_v44 }
 0x774   :  { %1983 = vmax.xlane.f32.xlu0 %v4065_v24 }
 0x776   :  { %1985 = vmax.xlane.f32.xlu1 %v4070_v42 }
 0x7e2   :  { %v1960_v16 = vpop.xlane.xlu0 %1959 }
 0x7e3   :  { %v1989_v12 = vsub.f32 %v3945_v39, %v1960_v16 }
 0x7e4   :  { %v1962_v21 = vpop.xlane.xlu1 %1961 }
 0x7e5   :  { %v2007_v6 = vmul.f32 1.442695, %v1989_v12  ;;  %v1990_v34 = vsub.f32 %v3956_v50, %v1962_v21 }
 0x7e6   :  { %v1956_v18 = vpop.xlane.xlu0 %1955 }
 0x7e7   :  { %2847 = vpow2.f32 %v2007_v6  ;;  %v2009_v15 = vmul.f32 1.442695, %v1990_v34  ;;  %v1987_v19 = vsub.f32 %v3963_v4, %v1956_v18 }
 0x7e8   :  { %v1958_v10 = vpop.xlane.xlu1 %1957 }
 0x7e9   :  { %2849 = vpow2.f32 %v2009_v15  ;;  %v2003_v37 = vmul.f32 1.442695, %v1987_v19  ;;  %v1988_v41 = vsub.f32 %v3974_v61, %v1958_v10 }
 0x7ea   :  { %v1968_v40 = vpop.xlane.xlu0 %1967 }
 0x7eb   :  { %2851 = vpow2.f32 %v2003_v37  ;;  %v2005_v27 = vmul.f32 1.442695, %v1988_v41  ;;  %v1993_v60 = vsub.f32 %v3990_v0, %v1968_v40 }
 0x7ec   :  { %v1970_v39 = vpop.xlane.xlu1 %1969 }
 0x7ed   :  { %2853 = vpow2.f32 %v2005_v27  ;;  %v2015_v11 = vmul.f32 1.442695, %v1993_v60  ;;  %v1994_v50 = vsub.f32 %v3997_v45, %v1970_v39 }
 0x7ee   :  { %v1964_v1 = vpop.xlane.xlu0 %1963 }
 0x7ef   :  { %2855 = vpow2.f32 %v2015_v11  ;;  %v2017_v62 = vmul.f32 1.442695, %v1994_v50  ;;  %v1991_v4 = vsub.f32 %v4002_v7, %v1964_v1 }
 0x7f0   :  { %v1966_v53 = vpop.xlane.xlu1 %1965 }
 0x7f1   :  { %v4080_v55 = vpop.eup %2847  ;;  %2857 = vpow2.f32 %v2017_v62  ;;  %v2011_v61 = vmul.f32 1.442695, %v1991_v4  ;;  %v1992_v5 = vsub.f32 %v4007_v2, %v1966_v53 }
 0x7f2   :  { %2039 = vadd.xlane.f32.xlu0 %v4080_v55 }
 0x7f3   :  { %v4084_v0 = vpop.eup %2849  ;;  %2859 = vpow2.f32 %v2011_v61  ;;  %v2013_v28 = vmul.f32 1.442695, %v1992_v5 }
 0x7f4   :  { %v1976_v8 = vpop.xlane.xlu0 %1975  ;;  %2041 = vadd.xlane.f32.xlu1 %v4084_v0 }
 0x7f5   :  { %v4087_v45 = vpop.eup %2851  ;;  %2861 = vpow2.f32 %v2013_v28  ;;  %v1997_v7 = vsub.f32 %v4023_v59, %v1976_v8 }
 0x7f6   :  { %v1978_v13 = vpop.xlane.xlu1 %1977  ;;  %2035 = vadd.xlane.f32.xlu0 %v4087_v45 }
 0x7f7   :  { %v4091_v57 = vpop.eup %2853  ;;  %v2023_v2 = vmul.f32 1.442695, %v1997_v7  ;;  %v1998_v38 = vsub.f32 %v4034_v54, %v1978_v13 }
 0x7f8   :  { %v1972_v30 = vpop.xlane.xlu0 %1971  ;;  %2037 = vadd.xlane.f32.xlu1 %v4091_v57 }
 0x7f9   :  { %v4095_v3 = vpop.eup %2855  ;;  %2863 = vpow2.f32 %v2023_v2  ;;  %v2025_v33 = vmul.f32 1.442695, %v1998_v38  ;;  %v1995_v32 = vsub.f32 %v4041_v63, %v1972_v30 }
 0x7fa   :  { %v1974_v35 = vpop.xlane.xlu1 %1973  ;;  %2047 = vadd.xlane.f32.xlu0 %v4095_v3 }
 0x7fb   :  { %v4099_v59 = vpop.eup %2857  ;;  %2865 = vpow2.f32 %v2025_v33  ;;  %v2019_v56 = vmul.f32 1.442695, %v1995_v32  ;;  %v1996_v36 = vsub.f32 %v4048_v43, %v1974_v35 }
 0x7fc   :  { %2049 = vadd.xlane.f32.xlu1 %v4099_v59 }
 0x7fd   :  { %v4103_v54 = vpop.eup %2859  ;;  %2867 = vpow2.f32 %v2019_v56  ;;  %v2021_v26 = vmul.f32 1.442695, %v1996_v36  ;;  %v1980_v49 = vpop.xlane.xlu0 %1979 }
 0x7fe   :  { %v1999_v17 = vsub.f32 %v4055_v14, %v1980_v49  ;;  %2043 = vadd.xlane.f32.xlu0 %v4103_v54 }
 0x7ff   :  { %v4107_v48 = vpop.eup %2861  ;;  %2869 = vpow2.f32 %v2021_v26  ;;  %v1982_v63 = vpop.xlane.xlu1 %1981 }
 0x800   :  { %v2027_v29 = vmul.f32 1.442695, %v1999_v17  ;;  %v2000_v51 = vsub.f32 %v4060_v44, %v1982_v63  ;;  %2045 = vadd.xlane.f32.xlu1 %v4107_v48 }
 0x801   :  { %v1984_v47 = vpop.xlane.xlu0 %1983 }
 0x802   :  { %2871 = vpow2.f32 %v2027_v29  ;;  %v2029_v46 = vmul.f32 1.442695, %v2000_v51  ;;  %v2001_v31 = vsub.f32 %v4065_v24, %v1984_v47 }
 0x803   :  { %v4112_v43 = vpop.eup %2863  ;;  %v1986_v58 = vpop.xlane.xlu1 %1985 }
 0x804   :  { %2873 = vpow2.f32 %v2029_v46  ;;  %v2031_v20 = vmul.f32 1.442695, %v2001_v31  ;;  %v2002_v52 = vsub.f32 %v4070_v42, %v1986_v58  ;;  %2055 = vadd.xlane.f32.xlu0 %v4112_v43 }
 0x805   :  { %v4116_v9 = vpop.eup %2865 }
 0x806   :  { %2875 = vpow2.f32 %v2031_v20  ;;  %v2033_v14 = vmul.f32 1.442695, %v2002_v52  ;;  %2057 = vadd.xlane.f32.xlu1 %v4116_v9 }
 0x807   :  { %v4119_v22 = vpop.eup %2867 }
 0x808   :  { %2877 = vpow2.f32 %v2033_v14  ;;  %2051 = vadd.xlane.f32.xlu0 %v4119_v22 }
 0x809   :  { %v4122_v23 = vpop.eup %2869 }
 0x80a   :  { %2053 = vadd.xlane.f32.xlu1 %v4122_v23 }
 0x80c   :  { %v4125_v44 = vpop.eup %2871 }
 0x80d   :  { %2059 = vadd.xlane.f32.xlu0 %v4125_v44 }
 0x80e   :  { %v4128_v25 = vpop.eup %2873 }
 0x80f   :  { %2061 = vadd.xlane.f32.xlu1 %v4128_v25 }
 0x810   :  { %v4131_v24 = vpop.eup %2875 }
 0x811   :  { %2063 = vadd.xlane.f32.xlu0 %v4131_v24 }
 0x812   :  { %v4134_v42 = vpop.eup %2877 }
 0x813   :  { %2065 = vadd.xlane.f32.xlu1 %v4134_v42 }
 0x87f   :  { %v2040_v16 = vpop.xlane.xlu0 %2039 }
 0x880   :  { %2879 = vrcp.f32 %v2040_v16 }
 0x881   :  { %v2042_v12 = vpop.xlane.xlu1 %2041 }
 0x882   :  { %2881 = vrcp.f32 %v2042_v12 }
 0x883   :  { %v2036_v21 = vpop.xlane.xlu0 %2035 }
 0x884   :  { %2883 = vrcp.f32 %v2036_v21 }
 0x885   :  { %v2038_v6 = vpop.xlane.xlu1 %2037 }
 0x886   :  { %2885 = vrcp.f32 %v2038_v6 }
 0x887   :  { %v2048_v34 = vpop.xlane.xlu0 %2047 }
 0x888   :  { %2887 = vrcp.f32 %v2048_v34 }
 0x889   :  { %v2050_v18 = vpop.xlane.xlu1 %2049 }
 0x88a   :  { %v2880_v15 = vpop.eup %2879  ;;  %2889 = vrcp.f32 %v2050_v18 }
 0x88b   :  { %v2072_v19 = vmul.f32 %v2880_v15, %v4080_v55  ;;  %v2044_v10 = vpop.xlane.xlu0 %2043 }
 0x88c   :  { %v2882_v37 = vpop.eup %2881  ;;  %2891 = vrcp.f32 %v2044_v10 }
 0x88d   :  { %2101 = vst [vmem:[#allocation11 + $0x10] sm:$0xff] %v2072_v19  ;;  %v2074_v41 = vmul.f32 %v2882_v37, %v4084_v0  ;;  %v2046_v40 = vpop.xlane.xlu1 %2045 }
 0x88e   :  { %v2884_v27 = vpop.eup %2883  ;;  %2893 = vrcp.f32 %v2046_v40 }
 0x88f   :  { %2102 = vst [vmem:[#allocation11 + $0x18] sm:$0xff] %v2074_v41  ;;  %v2068_v60 = vmul.f32 %v2884_v27, %v4087_v45 }
 0x890   :  { %v2886_v39 = vpop.eup %2885 }
 0x891   :  { %2099 = vst [vmem:[#allocation11] sm:$0xff] %v2068_v60  ;;  %v2070_v11 = vmul.f32 %v2886_v39, %v4091_v57  ;;  %v2056_v50 = vpop.xlane.xlu0 %2055 }
 0x892   :  { %v2888_v1 = vpop.eup %2887  ;;  %2895 = vrcp.f32 %v2056_v50 }
 0x893   :  { %2100 = vst [vmem:[#allocation11 + $0x8] sm:$0xff] %v2070_v11  ;;  %v2080_v62 = vmul.f32 %v2888_v1, %v4095_v3  ;;  %v2058_v4 = vpop.xlane.xlu1 %2057 }
 0x894   :  { %v2890_v53 = vpop.eup %2889  ;;  %2897 = vrcp.f32 %v2058_v4 }
 0x895   :  { %2105 = vst [vmem:[#allocation11 + $0x30] sm:$0xff] %v2080_v62  ;;  %v2082_v55 = vmul.f32 %v2890_v53, %v4099_v59  ;;  %v2052_v61 = vpop.xlane.xlu0 %2051 }
 0x896   :  { %v2892_v5 = vpop.eup %2891  ;;  %2899 = vrcp.f32 %v2052_v61 }
 0x897   :  { %2106 = vst [vmem:[#allocation11 + $0x38] sm:$0xff] %v2082_v55  ;;  %v2076_v0 = vmul.f32 %v2892_v5, %v4103_v54  ;;  %v2054_v28 = vpop.xlane.xlu1 %2053 }
 0x898   :  { %v2894_v8 = vpop.eup %2893  ;;  %2901 = vrcp.f32 %v2054_v28 }
 0x899   :  { %2103 = vst [vmem:[#allocation11 + $0x20] sm:$0xff] %v2076_v0  ;;  %v2078_v45 = vmul.f32 %v2894_v8, %v4107_v48 }
 0x89a   :  { %v2060_v7 = vpop.xlane.xlu0 %2059 }
 0x89b   :  { %2104 = vst [vmem:[#allocation11 + $0x28] sm:$0xff] %v2078_v45  ;;  %2903 = vrcp.f32 %v2060_v7 }
 0x89c   :  { %v2896_v13 = vpop.eup %2895  ;;  %v2062_v57 = vpop.xlane.xlu1 %2061 }
 0x89d   :  { %v2088_v2 = vmul.f32 %v2896_v13, %v4112_v43  ;;  %2905 = vrcp.f32 %v2062_v57 }
 0x89e   :  { %v2898_v38 = vpop.eup %2897  ;;  %v2064_v30 = vpop.xlane.xlu0 %2063 }
 0x89f   :  { %2109 = vst [vmem:[#allocation11 + $0x50] sm:$0xff] %v2088_v2  ;;  %v2090_v3 = vmul.f32 %v2898_v38, %v4116_v9  ;;  %2907 = vrcp.f32 %v2064_v30 }
 0x8a0   :  { %v2900_v33 = vpop.eup %2899  ;;  %v2066_v32 = vpop.xlane.xlu1 %2065 }
 0x8a1   :  { %2110 = vst [vmem:[#allocation11 + $0x58] sm:$0xff] %v2090_v3  ;;  %v2084_v35 = vmul.f32 %v2900_v33, %v4119_v22  ;;  %2909 = vrcp.f32 %v2066_v32 }
 0x8a2   :  { %v2902_v59 = vpop.eup %2901 }
 0x8a3   :  { %2107 = vst [vmem:[#allocation11 + $0x40] sm:$0xff] %v2084_v35  ;;  %v2086_v56 = vmul.f32 %v2902_v59, %v4122_v23 }
 0x8a5   :  { %v2904_v36 = vpop.eup %2903  ;;  %2108 = vst [vmem:[#allocation11 + $0x48] sm:$0xff] %v2086_v56 }
 0x8a6   :  { %v2092_v54 = vmul.f32 %v2904_v36, %v4125_v44 }
 0x8a7   :  { %v2906_v26 = vpop.eup %2905 }
 0x8a8   :  { %2111 = vst [vmem:[#allocation11 + $0x60] sm:$0xff] %v2092_v54  ;;  %v2094_v49 = vmul.f32 %v2906_v26, %v4128_v25 }
 0x8a9   :  { %v2908_v17 = vpop.eup %2907 }
 0x8aa   :  { %2112 = vst [vmem:[#allocation11 + $0x68] sm:$0xff] %v2094_v49  ;;  %v2096_v48 = vmul.f32 %v2908_v17, %v4131_v24 }
 0x8ab   :  { %v2910_v63 = vpop.eup %2909 }
 0x8ac   :  { %2113 = vst [vmem:[#allocation11 + $0x70] sm:$0xff] %v2096_v48  ;;  %v2098_v29 = vmul.f32 %v2910_v63, %v4134_v42 }
 0x8ae   :  { %2114 = vst [vmem:[#allocation11 + $0x78] sm:$0xff] %v2098_v29 }
 0x8af   :  { %3032 = shalt.err (!%p3029_p2)
}
 0x8b0   :  { %s3033_s11 = scalar_lea.hbm %s4181_s16, 2048 }
 0x8b1   :  { %p3034_p3 = scmp.ne.s32.totalorder %s4181_s16, %s3033_s11  ;;  %p3037_p4 = scmp.lt.u32.totalorder %s3033_s11, %s4181_s16 }
 0x8b3   :  { %p3039_p5 = pnand %p3037_p4, %p3034_p3 }
 0x8b5   :  { %3042 = shalt.err (!%p3039_p5)
}
 0x8b6   :  { %s3059_s24 = smov 128   ;;  %s3060_s29 = smov 8  }
 0x8b7   :  { %2126 = dma.vmem_to_hbm [thread:$0]  %s2121_s4, 2048, %s4181_s16, [#allocation4], %s3059_s24, %s3059_s24, %s3060_s29  }
 0x8b8   :  { %3049 = dma.done.wait [#allocation4], 2048  }
 0x8b9   :  { %3050 = vsyncadd [#allocation4], 4294965248 }
 0x8ba   :  { %2130 = vsyncpa [#allocation3], 1 }
 0x8bb   :  { %2131 = vsyncpa [#allocation6], 1 }
 0x8bc   :  { %2132 = vsyncpa [#allocation9], 1 }
 0x8bd   :  { %2133 = vsyncpa [#allocation4], 1 }

</bundles_post_ra>
